<compile_context>
chip_gen: v6e
topology: v6e:2x2x1
jax: 0.10.0
libtpu: 0.0.40
codegen_flags: <defaults>
</compile_context>

<pallas_src>
import jax
import jax.numpy as jnp
import numpy as np
from jax import lax
from jax.experimental import pallas as pl
from jax.experimental.pallas import tpu as pltpu

K2 = 9      # 3x3 neighbor taps
SUB = 64    # 8x8 sub-pixel positions
UP = 8      # upsampling factor


def propagation_kernel(hp_ref, w2_ref, dp_ref, o_ref):
    # conv2 (3x3, stride 1, no bias) as a single MXU matmul over the pixel tile.
    logits = jnp.dot(w2_ref[...], hp_ref[...],
                     preferred_element_type=jnp.float32)        # (576, T) f32
    t = logits.shape[-1]

    # channel ch = k*64 + (u*8+v)  ->  (k, j, pixel); tile-aligned reshape
    # (64 % 8 == 0, lane dim unchanged).
    lg = logits.reshape(K2, SUB, t)                             # (9, 64, T)

    # softmax over the 9 taps: leading-axis reductions = dense VPU work.
    m = jnp.max(lg, axis=0, keepdims=True)                      # (1, 64, T)
    e = jnp.exp(lg - m)                                         # (9, 64, T)  EUP
    den = jnp.sum(e, axis=0)                                    # (64, T)

    # weighted sum of the 3x3 neighborhood of 8*disp (broadcast over the 64
    # sub-pixel positions).
    dp = dp_ref[...]                                            # (9, T) f32
    num = jnp.sum(e * dp[:, None, :], axis=0)                   # (64, T)

    o_ref[...] = (num * pl.reciprocal(den, approx=True)).astype(o_ref.dtype)


def im2col_cmajor(x, k, stride, pad):
    """torch.nn.functional.unfold with the pixel axis LAST (lane-dense).

    Returns (C*k*k, B*Ho*Wo); rows ordered (c, ky, kx), cols ordered (b, y, x).
    """
    b, c, h, w = x.shape
    xp = jnp.pad(x, ((0, 0), (0, 0), (pad, pad), (pad, pad)))
    ho = (h + 2 * pad - k) // stride + 1
    wo = (w + 2 * pad - k) // stride + 1
    taps = []
    for ky in range(k):
        for kx in range(k):
            taps.append(xp[:, :, ky:ky + stride * ho:stride, kx:kx + stride * wo:stride])
    pat = jnp.stack(taps, axis=2)                               # (b, c, k*k, ho, wo)
    pat = pat.transpose(1, 2, 0, 3, 4).reshape(c * k * k, b * ho * wo)
    return pat, ho, wo


def propagation_net_1x(guidance, disp, params, *, tile=512, interpret=False):
    b, c_in, hg, wg = guidance.shape
    _, _, h, w = disp.shape
    assert hg == 2 * h and wg == 2 * w, "guidance must be 2x the disparity resolution"
    c_hid = 2 * c_in
    assert params["w2"].shape[0] == K2 * SUB

    # ---- conv1 (3x3, stride 2, pad 1) with eval-mode BN folded, then ReLU ----
    eps = 1e-5
    bn_scale = params["gamma"] / jnp.sqrt(params["var"] + eps)
    bn_shift = params["beta"] - params["mean"] * bn_scale
    w1f = params["w1"] * bn_scale[:, None, None, None]
    hidden = lax.conv_general_dilated(
        guidance, w1f, (2, 2), ((1, 1), (1, 1)),
        dimension_numbers=("NCHW", "OIHW", "NCHW"))
    hidden = jnp.maximum(hidden + bn_shift[None, :, None, None], 0.0)   # ReLU

    # ---- im2col for conv2 + disp unfold, pixel axis on lanes -----------------
    hp, ho, wo = im2col_cmajor(hidden, 3, 1, 1)                  # (c_hid*9, N)
    dp, _, _ = im2col_cmajor(8.0 * disp, 3, 1, 1)                # (9, N)
    n = b * ho * wo

    # bf16 MXU operands (halves HBM bytes of the dominant operand), f32 math
    # for the softmax / weighted sum inside the kernel.
    hp = hp.astype(jnp.bfloat16)
    w2m = params["w2"].reshape(K2 * SUB, c_hid * K2).astype(jnp.bfloat16)
    dp = dp.astype(jnp.float32)

    # Lane tile: large (per-grid-step overhead ~0.35us), but shrink so the grid
    # has >= 2 steps to keep both v7x TensorCores busy. Per-step VMEM is tiny.
    t = tile
    while t > 128 and n < 2 * t:
        t //= 2
    n_pad = pl.cdiv(n, t) * t
    if n_pad != n:
        hp = jnp.pad(hp, ((0, 0), (0, n_pad - n)))
        dp = jnp.pad(dp, ((0, 0), (0, n_pad - n)))

    out = pl.pallas_call(
        propagation_kernel,
        out_shape=jax.ShapeDtypeStruct((SUB, n_pad), jnp.float32),
        grid=(n_pad // t,),
        in_specs=[
            pl.BlockSpec((c_hid * K2, t), lambda i: (0, i)),          # hidden patches
            pl.BlockSpec((K2 * SUB, c_hid * K2), lambda i: (0, 0)),   # conv2 weight
            pl.BlockSpec((K2, t), lambda i: (0, i)),                  # disp patches
        ],
        out_specs=pl.BlockSpec((SUB, t), lambda i: (0, i)),
        compiler_params=pltpu.CompilerParams(dimension_semantics=("parallel",)),
        interpret=interpret,
    )(hp, w2m, dp)

    # ---- pixel shuffle back to (B, 1, 8H, 8W) --------------------------------
    out = out[:, :n].reshape(UP, UP, b, ho, wo)          # (u, v, b, y, x)
    out = out.transpose(2, 3, 0, 4, 1)                   # (b, y, u, x, v)
    out = out.reshape(b, 1, UP * ho, UP * wo)
    return out.astype(disp.dtype)


def reference(guidance, disp, params):
    """Pure-JAX mirror of the PyTorch forward (eval-mode BN)."""
    b, _, h, w = disp.shape
    eps = 1e-5
    y1 = lax.conv_general_dilated(guidance, params["w1"], (2, 2), ((1, 1), (1, 1)),
                                  dimension_numbers=("NCHW", "OIHW", "NCHW"))
    sc = params["gamma"] / jnp.sqrt(params["var"] + eps)
    sh = params["beta"] - params["mean"] * sc
    y1 = jnp.maximum(y1 * sc[None, :, None, None] + sh[None, :, None, None], 0.0)
    logits = lax.conv_general_dilated(y1, params["w2"], (1, 1), ((1, 1), (1, 1)),
                                      dimension_numbers=("NCHW", "OIHW", "NCHW"))
    mask = jax.nn.softmax(logits.reshape(b, 1, K2, UP, UP, h, w), axis=2)
    dpat, _, _ = im2col_cmajor(8.0 * disp, 3, 1, 1)              # (9, b*h*w)
    dpat = dpat.reshape(K2, b, h, w).transpose(1, 0, 2, 3)       # (b, 9, h, w)
    dpat = dpat.reshape(b, 1, K2, 1, 1, h, w)
    up = jnp.sum(mask * dpat, axis=2)                            # (b, 1, 8, 8, h, w)
    up = up.transpose(0, 1, 4, 2, 5, 3).reshape(b, 1, UP * h, UP * w)
    return up


if __name__ == "__main__":
    B, C_IN, H, W = 2, 4, 16, 16           # disp (B,1,H,W), guidance (B,C_IN,2H,2W)
    c_hid = 2 * C_IN

    key = jax.random.PRNGKey(0)
    ks = jax.random.split(key, 8)
    guidance = jax.random.normal(ks[0], (B, C_IN, 2 * H, 2 * W), jnp.float32)
    disp = jax.random.normal(ks[1], (B, 1, H, W), jnp.float32)
    # Deterministic synthetic parameters (BatchNorm in eval mode with fixed
    # running statistics).
    params = {
        "w1": 0.1 * jax.random.normal(ks[2], (c_hid, C_IN, 3, 3), jnp.float32),
        "gamma": 1.0 + 0.1 * jax.random.normal(ks[3], (c_hid,), jnp.float32),
        "beta": 0.1 * jax.random.normal(ks[4], (c_hid,), jnp.float32),
        "mean": 0.1 * jax.random.normal(ks[5], (c_hid,), jnp.float32),
        "var": 1.0 + 0.1 * jax.random.uniform(ks[6], (c_hid,), jnp.float32),
        "w2": 0.1 * jax.random.normal(ks[7], (K2 * SUB, c_hid, 3, 3), jnp.float32),
    }

    out = propagation_net_1x(guidance, disp, params)
    out = jax.block_until_ready(out)
    assert out.shape == (B, 1, UP * H, UP * W)

    ref = reference(guidance, disp, params)
    # bf16 MXU inputs + approx reciprocal -> slightly loosened tolerance.
    np.testing.assert_allclose(np.asarray(out), np.asarray(ref), rtol=5e-2, atol=5e-2)
    print("KERNEL_OK")
</pallas_src>

<mosaic_0001>
module attributes {stable_mosaic.version = 11 : i64} {
  func.func @propagation_kernel(%arg0: i32, %arg1: memref<72x256xbf16, #tpu.memory_space<vmem>>, %arg2: memref<576x72xbf16, #tpu.memory_space<vmem>>, %arg3: memref<9x256xf32, #tpu.memory_space<vmem>>, %arg4: memref<64x256xf32, #tpu.memory_space<vmem>>) attributes {dimension_semantics = [#tpu.dimension_semantics<parallel>], iteration_bounds = array<i64: 2>, scalar_prefetch = 0 : i64, scratch_operands = 0 : i64, tpu.core_type = #tpu.core_type<tc>, window_params = [{transform_indices = @transform_0, window_bounds = array<i64: 72, 256>}, {pipeline_mode = #tpu.pipeline_mode<synchronous>, transform_indices = @transform_1, window_bounds = array<i64: 576, 72>}, {transform_indices = @transform_2, window_bounds = array<i64: 9, 256>}, {transform_indices = @transform_3, window_bounds = array<i64: 64, 256>}]} {
    %c0 = arith.constant 0 : index
    %c0_0 = arith.constant 0 : index
    %0 = vector.load %arg2[%c0, %c0_0] : memref<576x72xbf16, #tpu.memory_space<vmem>>, vector<576x72xbf16>
    %c0_1 = arith.constant 0 : index
    %c0_2 = arith.constant 0 : index
    %1 = vector.load %arg1[%c0_1, %c0_2] : memref<72x256xbf16, #tpu.memory_space<vmem>>, vector<72x256xbf16>
    %cst = arith.constant dense<0.000000e+00> : vector<576x256xf32>
    %2 = tpu.matmul %0, %1, %cst {dimension_numbers = #tpu.dot_dimension_numbers<[1], [0], [0], [1], [0, 0, 1, 1], [], []>} : vector<576x72xbf16>, vector<72x256xbf16>, vector<576x256xf32> -> vector<576x256xf32>
    %3 = vector.shape_cast %2 : vector<576x256xf32> to vector<9x64x256xf32>
    %cst_3 = arith.constant dense<0xFF800000> : vector<64x256xf32>
    %4 = vector.multi_reduction <maximumf>, %3, %cst_3 [0] : vector<9x64x256xf32> to vector<64x256xf32>
    %5 = vector.shape_cast %4 : vector<64x256xf32> to vector<1x64x256xf32>
    %6 = vector.broadcast %5 : vector<1x64x256xf32> to vector<9x64x256xf32>
    %7 = arith.subf %3, %6 : vector<9x64x256xf32>
    %8 = math.exp %7 : vector<9x64x256xf32>
    %cst_4 = arith.constant dense<0.000000e+00> : vector<64x256xf32>
    %9 = vector.multi_reduction <add>, %8, %cst_4 [0] : vector<9x64x256xf32> to vector<64x256xf32>
    %c0_5 = arith.constant 0 : index
    %c0_6 = arith.constant 0 : index
    %10 = vector.load %arg3[%c0_5, %c0_6] : memref<9x256xf32, #tpu.memory_space<vmem>>, vector<9x256xf32>
    %11 = vector.shape_cast %10 : vector<9x256xf32> to vector<9x1x256xf32>
    %12 = vector.broadcast %11 : vector<9x1x256xf32> to vector<9x64x256xf32>
    %13 = arith.mulf %8, %12 : vector<9x64x256xf32>
    %cst_7 = arith.constant dense<0.000000e+00> : vector<64x256xf32>
    %14 = vector.multi_reduction <add>, %13, %cst_7 [0] : vector<9x64x256xf32> to vector<64x256xf32>
    %15 = tpu.reciprocal %9 {approx = true} : vector<64x256xf32> -> vector<64x256xf32>
    %16 = arith.mulf %14, %15 : vector<64x256xf32>
    %c0_8 = arith.constant 0 : index
    %c0_9 = arith.constant 0 : index
    %17 = vector.load %arg4[%c0_8, %c0_9] : memref<64x256xf32, #tpu.memory_space<vmem>>, vector<64x256xf32>
    tpu.vector_store %arg4[%c0_8, %c0_9], %16 {strides = array<i32>} : memref<64x256xf32, #tpu.memory_space<vmem>>, vector<64x256xf32>,
    return
  }
  func.func @transform_0(%arg0: i32) -> (i32, i32) {
    %c0_i32 = arith.constant 0 : i32
    %c0_i32_0 = arith.constant 0 : i32
    return %c0_i32, %arg0 : i32, i32
  }
  func.func @transform_1(%arg0: i32) -> (i32, i32) {
    %c0_i32 = arith.constant 0 : i32
    %c0_i32_0 = arith.constant 0 : i32
    %c0_i32_1 = arith.constant 0 : i32
    return %c0_i32, %c0_i32_0 : i32, i32
  }
  func.func @transform_2(%arg0: i32) -> (i32, i32) {
    %c0_i32 = arith.constant 0 : i32
    %c0_i32_0 = arith.constant 0 : i32
    return %c0_i32, %arg0 : i32, i32
  }
  func.func @transform_3(%arg0: i32) -> (i32, i32) {
    %c0_i32 = arith.constant 0 : i32
    %c0_i32_0 = arith.constant 0 : i32
    return %c0_i32, %arg0 : i32, i32
  }
}

</mosaic_0001>

<bundles_post_ra>
// kernel: tpu_custom_call.1
= control target key start
LH: loop header
LB: loop body
LE: loop exit
PB: predicated region body
PF: predicated region fallthrough
CT: control target
= control target key end

     0   :  { %8 = vsyncpa [#allocation5], 0  ;;  %s4432_s0 = inlined_call_operand.vmem [shape: bf16[72,512], index: 0, kind: input, shape index: {}]   ;;  %s4433_s1 = inlined_call_operand.vmem [shape: bf16[576,72], index: 1, kind: input, shape index: {}]   ;;  %s4434_s2 = inlined_call_operand.vmem [shape: f32[9,512], index: 2, kind: input, shape index: {}]   ;;  %s4435_s3 = inlined_call_operand.hbm [shape: f32[64,512], index: 3, kind: output, shape index: {}]  }
   0x1   :  { %10 = vsyncpa [#allocation5 + $0x1], 0  ;;  %s2993_s12 = smov 0   ;;  %s2995_s13 = smov 0  }
   0x2   :  { %s2997_s14 = smov 0   ;;  %s2999_s15 = smov 0  }
   0x3 LB: > { %s2372_s16 = sadd.s32 4294967295, %s2965_s15   ;;  %s2373_s17 = sadd.s32 4294967294, %s2965_s15   ;;  %s2965_s15 = sphi %s2999_s15, %s4914_s15   ;;  %s2961_s14 = sphi %s2997_s14, %s4913_s14   ;;  %s2957_s13 = sphi %s2995_s13, %s4912_s13   ;;  %s2953_s12 = sphi %s2993_s12, %s4911_s12  }
   0x4   : > { %s3016_s18 = sadd.s32 1, %s2965_s15   ;;  %s23_s19 = sadd.s32 1, %s2961_s14 }
   0x5   : > { %s20_s20 = ssub.s32 %s2965_s15, %s3016_s18  ;;  %p30_p0 = scmp.ne.s32.totalorder %s2961_s14, %s2957_s13 }
   0x6   : > { %p21_p1 = scmp.eq.s32.totalorder %s20_s20, 0  ;;  %p31_p2 = scmp.eq.s32.totalorder %s2965_s15, 0 }
   0x7   : > { %p107_p3 = scmp.eq.s32.totalorder %s2372_s16, 1  ;;  %p112_p4 = scmp.ne.s32.totalorder %s2957_s13, %s2953_s12 }
   0x8   : > { %s3029_s21 = scalar_select %p21_p1, %s2961_s14, %s23_s19  }
   0x9   : > { %p3031_p5 = por %p31_p2, %p30_p0  ;;  %p3035_p6 = por %p107_p3, %p30_p0 }
   0xa   : > { %p113_p7 = scmp.eq.s32.totalorder %s2373_s17, 1  ;;  %p2375_p9 = scmp.ge.s32.totalorder %s2965_s15, 2 }
   0xc   : > { %p3039_p8 = por %p113_p7, %p112_p4  ;;  %132 = sbr.rel (%p2375_p9) target bundleno = 32 (0x20), region = 20 }
  0x11   : > { %135 = sbr.rel (!%p3031_p5) target bundleno = 26 (0x1a), region = 24  ;;  %s137_s25 = sand.u32 (%p3031_p5), 1, %s2961_s14  }
  0x12   : > { %s2472_s26 = sshll.u32 (%p3031_p5), %s2965_s15, 3  ;;  %s2485_s27 = smul.u32 (%p3031_p5), 72, %s137_s25 }
  0x13   : > { %s142_s30 = scalar_lea.vmem (%p3031_p5), %s4432_s0, %s2472_s26 }
  0x14   : > { %v187_v0 = vld [vmem:[%s142_s30] sm:$0xff] (%p3031_p5)  ;;  %v189_v1 = vld [vmem:[%s142_s30 + $0x10] sm:$0xff] (%p3031_p5)  ;;  %s139_s4 = scalar_lea.vmem (%p3031_p5), [#allocation2], %s2485_s27 }
  0x15   : > { %v191_v2 = vld [vmem:[%s142_s30 + $0x20] sm:$0xff] (%p3031_p5)  ;;  %v193_v3 = vld [vmem:[%s142_s30 + $0x30] sm:$0xff] (%p3031_p5)  ;;  %188 = vst [vmem:[%s139_s4] sm:$0xff] (%p3031_p5), %v187_v0  ;;  %190 = vst [vmem:[%s139_s4 + $0x8] sm:$0xff] (%p3031_p5), %v189_v1 }
  0x16   : > { %v195_v4 = vld [vmem:[%s142_s30 + $0x40] sm:$0xff]  ;;  %v197_v5 = vld [vmem:[%s142_s30 + $0x50] sm:$0xff]  ;;  %192 = vst [vmem:[%s139_s4 + $0x10] sm:$0xff] %v191_v2  ;;  %194 = vst [vmem:[%s139_s4 + $0x18] sm:$0xff] %v193_v3 }
  0x17   : > { %196 = vst [vmem:[%s139_s4 + $0x20] sm:$0xff] %v195_v4  ;;  %198 = vst [vmem:[%s139_s4 + $0x28] sm:$0xff] %v197_v5  ;;  %v199_v6 = vld [vmem:[%s142_s30 + $0x60] sm:$0xff]  ;;  %v201_v7 = vld [vmem:[%s142_s30 + $0x70] sm:$0xff] }
  0x18   : > { %v203_v8 = vld [vmem:[%s142_s30 + $0x80] sm:$0xff]  ;;  %200 = vst [vmem:[%s139_s4 + $0x30] sm:$0xff] %v199_v6  ;;  %202 = vst [vmem:[%s139_s4 + $0x38] sm:$0xff] %v201_v7 }
  0x19   : > { %204 = vst [vmem:[%s139_s4 + $0x40] sm:$0xff] %v203_v8 }
  0x1a PF: > { %210 = sbr.rel (!%p3031_p5) target bundleno = 32 (0x20), region = 62  ;;  %s212_s5 = sand.u32 (%p3031_p5), 1, %s2961_s14  }
  0x1b   : > { %s2473_s6 = sshll.u32 (%p3031_p5), %s2965_s15, 4  ;;  %s2378_s7 = sshll.u32 (%p3031_p5), %s212_s5, 5 }
  0x1c   : > { %s217_s10 = scalar_lea.vmem (%p3031_p5), %s4434_s2, %s2473_s6  ;;  %s214_s11 = scalar_lea.vmem (%p3031_p5), [#allocation3], %s2378_s7 }
  0x1d   : > { %v230_v9 = vld [vmem:[%s217_s10] sm:$0xff] (%p3031_p5)  ;;  %v232_v10 = vld [vmem:[%s217_s10 + $0x8] sm:$0xff] (%p3031_p5) }
  0x1e   : > { %v234_v11 = vld [vmem:[%s217_s10 + $0x20] sm:$0xff] (%p3031_p5)  ;;  %231 = vst [vmem:[%s214_s11] sm:$0xff] (%p3031_p5), %v230_v9  ;;  %233 = vst [vmem:[%s214_s11 + $0x8] sm:$0xff] (%p3031_p5), %v232_v10  ;;  %v236_v12 = vld [vmem:[%s217_s10 + $0x28] sm:$0xff] (%p3031_p5) }
  0x1f   : > { %235 = vst [vmem:[%s214_s11 + $0x10] sm:$0xff] %v234_v11  ;;  %237 = vst [vmem:[%s214_s11 + $0x18] sm:$0xff] %v236_v12 }
  0x20 PF: > { %p2381_p10 = scmp.ge.s32.totalorder %s2965_s15, 1  ;;  %p242_p11 = scmp.lt.s32.totalorder %s2965_s15, 3 }
  0x22   : > { %p243_p12 = pnand %p2381_p10, %p242_p11 }
  0x24   : > { %246 = sbr.rel (%p243_p12) target bundleno = 667 (0x29b), region = 85 }
  0x29   : > { %s3063_s17 = sand.u32 1, %s2957_s13   ;;  %v2967_v13 = vmov 0   ;;  %vm702_vm0 = vcmask 1043456   ;;  %v2545_v26 = vld [vmem:[%s4433_s1] sm:$0xff]   ;;  %v2546_v27 = vld [vmem:[%s4433_s1 + $0x90] sm:$0xff]   ;;  %vm593_vm1 = vcmask 588800  }
  0x2a   : > { %s2486_s19 = smul.u32 72, %s3063_s17  ;;  %741 = vmatprep.mubr.bf16.mxu0 %v2967_v13  ;;  %921 = vmatprep.mubr.bf16.mxu1 %v2967_v13  ;;  %v2547_v28 = vld [vmem:[%s4433_s1 + $0x8] sm:$0xff]   ;;  %v2548_v29 = vld [vmem:[%s4433_s1 + $0x98] sm:$0xff]   ;;  %v2549_v30 = vld [vmem:[%s4433_s1 + $0x10] sm:$0xff]   ;;  %s2382_s7 = sshll.u32 %s3063_s17, 5 }
  0x2b   : > { %v2550_v31 = vld [vmem:[%s4433_s1 + $0xa0] sm:$0xff]   ;;  %s3097_s10 = scalar_lea.vmem [#allocation3], %s2382_s7  ;;  %v2551_v32 = vld [vmem:[%s4433_s1 + $0x18] sm:$0xff]   ;;  %v2552_v33 = vld [vmem:[%s4433_s1 + $0xa8] sm:$0xff]   ;;  %s2474_s8 = sshll.u32 %s2372_s16, 8 }
  0x2c   : > { %s251_s20 = scalar_lea.vmem [#allocation2], %s2486_s19  ;;  %v2553_v34 = vld [vmem:[%s4433_s1 + $0x20] sm:$0xff]   ;;  %v2554_v35 = vld [vmem:[%s4433_s1 + $0xb0] sm:$0xff]   ;;  %v2555_v36 = vld [vmem:[%s4433_s1 + $0x28] sm:$0xff]   ;;  %s4388_s19 = scalar_lea.hbm %s4435_s3, %s2474_s8 }
  0x2d   : > { %v367_v14 = vld [vmem:[%s251_s20 + $0x40] sm:$0xff]  ;;  %v2533_v17 = vld [vmem:[%s251_s20 + $0x34] ss:$8 sps:$4 sm:$0xff]   ;;  %v2535_v19 = vld [vmem:[%s251_s20 + $0x30] ss:$8 sps:$4 sm:$0xff]   ;;  %s2969_s16 = smov [#allocation4]  }
  0x2e   : > { %v2429_v15 = vcombine.high %v367_v14, %v367_v14  ;;  %v2428_v16 = vcombine.low %v367_v14, %v367_v14  ;;  %v2536_v20 = vld [vmem:[%s251_s20 + $0x24] ss:$8 sps:$4 sm:$0xff]   ;;  %v2538_v21 = vld [vmem:[%s251_s20 + $0x20] ss:$8 sps:$4 sm:$0xff]   ;;  %v2539_v22 = vld [vmem:[%s251_s20 + $0x14] ss:$8 sps:$4 sm:$0xff]  }
  0x2f   : > { %v2541_v23 = vld [vmem:[%s251_s20 + $0x10] ss:$8 sps:$4 sm:$0xff]   ;;  %v2542_v24 = vld [vmem:[%s251_s20 + $0x4] ss:$8 sps:$4 sm:$0xff]   ;;  %v2544_v25 = vld [vmem:[%s251_s20] ss:$8 sps:$4 sm:$0xff]  }
  0x30   : > { %2430 = vmatprep.subr.msk.bf16.mxu0 %vm702_vm0, %v2429_v15  ;;  %2475 = vmatprep.subr.msk.bf16.mxu1 %vm702_vm0, %v2429_v15  ;;  %v704_v18 = vsel %vm702_vm0, %v2428_v16, 0  ;;  %v2556_v37 = vld [vmem:[%s4433_s1 + $0xb8] sm:$0xff]   ;;  %v2557_v38 = vld [vmem:[%s4433_s1 + $0x30] sm:$0xff]   ;;  %v2558_v39 = vld [vmem:[%s4433_s1 + $0xc0] sm:$0xff]   ;;  %s2274_s20 = scalar_lea.sflag [#allocation5], %s3063_s17  ;;  %s2909_s25 = sshll.u32 %s2969_s16, 4  ;;  %s2910_s25 = int_to_ptr.vmem [resolvable:$false] %s2909_s25 }
  0x31   : > { %716 = vmatpush1.bf16.msra.mxu0 %v704_v18  ;;  %2480 = vmatpush1.bf16.msra.mxu1 %v704_v18  ;;  %v2559_v40 = vld [vmem:[%s4433_s1 + $0x38] sm:$0xff]   ;;  %v2560_v41 = vld [vmem:[%s4433_s1 + $0xc8] sm:$0xff]   ;;  %v2561_v42 = vld [vmem:[%s4433_s1 + $0x40] sm:$0xff]   ;;  %s2911_s26 = scalar_lea.vmem %s2910_s25, 4096 }
  0x32   : > { %717 = vmatprep.subr.bf16.mxu0 %v2533_v17  ;;  %2476 = vmatprep.subr.bf16.mxu1 %v2533_v17  ;;  %v2562_v43 = vld [vmem:[%s4433_s1 + $0xd0] sm:$0xff]   ;;  %v2563_v44 = vld [vmem:[%s4433_s1 + $0x48] sm:$0xff]   ;;  %v2564_v45 = vld [vmem:[%s4433_s1 + $0xd8] sm:$0xff]  }
  0x33   : > { %v2565_v46 = vld [vmem:[%s4433_s1 + $0x50] sm:$0xff]   ;;  %v2566_v47 = vld [vmem:[%s4433_s1 + $0xe0] sm:$0xff]   ;;  %v2567_v48 = vld [vmem:[%s4433_s1 + $0x58] sm:$0xff]  }
  0x34   : > { %v2568_v49 = vld [vmem:[%s4433_s1 + $0xe8] sm:$0xff]   ;;  %v2569_v50 = vld [vmem:[%s4433_s1 + $0x60] sm:$0xff]   ;;  %v2570_v51 = vld [vmem:[%s4433_s1 + $0xf0] sm:$0xff]  }
  0x35   : > { %718 = vmatpush1.bf16.msra.mxu0 %v2535_v19  ;;  %2481 = vmatpush1.bf16.msra.mxu1 %v2535_v19  ;;  %v2571_v52 = vld [vmem:[%s4433_s1 + $0x68] sm:$0xff]   ;;  %v2572_v53 = vld [vmem:[%s4433_s1 + $0xf8] sm:$0xff]   ;;  %v2573_v54 = vld [vmem:[%s4433_s1 + $0x70] sm:$0xff]  }
  0x36   : > { %719 = vmatprep.subr.bf16.mxu0 %v2536_v20  ;;  %2477 = vmatprep.subr.bf16.mxu1 %v2536_v20  ;;  %v2574_v55 = vld [vmem:[%s4433_s1 + $0x100] sm:$0xff]   ;;  %v2575_v56 = vld [vmem:[%s4433_s1 + $0x78] sm:$0xff]   ;;  %v2576_v57 = vld [vmem:[%s4433_s1 + $0x108] sm:$0xff]  }
  0x37   : > { %v2577_v58 = vld [vmem:[%s4433_s1 + $0x80] sm:$0xff]   ;;  %v2578_v59 = vld [vmem:[%s4433_s1 + $0x110] sm:$0xff]   ;;  %v2579_v60 = vld [vmem:[%s4433_s1 + $0x88] sm:$0xff]  }
  0x38   : > { %v2580_v61 = vld [vmem:[%s4433_s1 + $0x118] sm:$0xff]  }
  0x39   : > { %720 = vmatpush1.bf16.msra.mxu0 %v2538_v21  ;;  %2482 = vmatpush1.bf16.msra.mxu1 %v2538_v21 }
  0x3a   : > { %721 = vmatprep.subr.bf16.mxu0 %v2539_v22  ;;  %2478 = vmatprep.subr.bf16.mxu1 %v2539_v22 }
  0x3d   : > { %722 = vmatpush1.bf16.msra.mxu0 %v2541_v23  ;;  %2483 = vmatpush1.bf16.msra.mxu1 %v2541_v23 }
  0x3e   : > { %723 = vmatprep.subr.bf16.mxu0 %v2542_v24  ;;  %2479 = vmatprep.subr.bf16.mxu1 %v2542_v24 }
  0x41   : > { %724 = vmatpush1.bf16.msra.mxu0 %v2544_v25  ;;  %2484 = vmatpush1.bf16.msra.mxu1 %v2544_v25 }
  0x44   : > { %2431 = vmatmul.mubr.msk.bf16.vlgmr.msra.gmra.mxu0 %vm593_vm1, %v2545_v26  ;;  %2449 = vmatmul.mubr.msk.bf16.vlgmr.msra.gmra.mxu1 %vm593_vm1, %v2546_v27 }
  0x45   : > { %751 = vmatprep.mubr.bf16.mxu0 %v2967_v13  ;;  %931 = vmatprep.mubr.bf16.mxu1 %v2967_v13 }
  0x4c   : > { %2432 = vmatmul.mubr.msk.bf16.gmra.mxu0 %vm593_vm1, %v2547_v28  ;;  %2450 = vmatmul.mubr.msk.bf16.gmra.mxu1 %vm593_vm1, %v2548_v29 }
  0x4d   : > { %761 = vmatprep.mubr.bf16.mxu0 %v2967_v13  ;;  %941 = vmatprep.mubr.bf16.mxu1 %v2967_v13 }
  0x54   : > { %2433 = vmatmul.mubr.msk.bf16.gmra.mxu0 %vm593_vm1, %v2549_v30  ;;  %2451 = vmatmul.mubr.msk.bf16.gmra.mxu1 %vm593_vm1, %v2550_v31 }
  0x55   : > { %771 = vmatprep.mubr.bf16.mxu0 %v2967_v13  ;;  %951 = vmatprep.mubr.bf16.mxu1 %v2967_v13 }
  0x5c   : > { %2434 = vmatmul.mubr.msk.bf16.gmra.mxu0 %vm593_vm1, %v2551_v32  ;;  %2452 = vmatmul.mubr.msk.bf16.gmra.mxu1 %vm593_vm1, %v2552_v33 }
  0x5d   : > { %781 = vmatprep.mubr.bf16.mxu0 %v2967_v13  ;;  %961 = vmatprep.mubr.bf16.mxu1 %v2967_v13 }
  0x64   : > { %2435 = vmatmul.mubr.msk.bf16.gmra.mxu0 %vm593_vm1, %v2553_v34  ;;  %2453 = vmatmul.mubr.msk.bf16.gmra.mxu1 %vm593_vm1, %v2554_v35 }
  0x65   : > { %791 = vmatprep.mubr.bf16.mxu0 %v2967_v13  ;;  %971 = vmatprep.mubr.bf16.mxu1 %v2967_v13 }
  0x6c   : > { %2436 = vmatmul.mubr.msk.bf16.gmra.mxu0 %vm593_vm1, %v2555_v36  ;;  %2454 = vmatmul.mubr.msk.bf16.gmra.mxu1 %vm593_vm1, %v2556_v37 }
  0x6d   : > { %801 = vmatprep.mubr.bf16.mxu0 %v2967_v13  ;;  %981 = vmatprep.mubr.bf16.mxu1 %v2967_v13 }
  0x74   : > { %2437 = vmatmul.mubr.msk.bf16.gmra.mxu0 %vm593_vm1, %v2557_v38  ;;  %2455 = vmatmul.mubr.msk.bf16.gmra.mxu1 %vm593_vm1, %v2558_v39 }
  0x75   : > { %811 = vmatprep.mubr.bf16.mxu0 %v2967_v13  ;;  %991 = vmatprep.mubr.bf16.mxu1 %v2967_v13 }
  0x7c   : > { %2438 = vmatmul.mubr.msk.bf16.gmra.mxu0 %vm593_vm1, %v2559_v40  ;;  %2456 = vmatmul.mubr.msk.bf16.gmra.mxu1 %vm593_vm1, %v2560_v41 }
  0x7d   : > { %821 = vmatprep.mubr.bf16.mxu0 %v2967_v13  ;;  %1001 = vmatprep.mubr.bf16.mxu1 %v2967_v13 }
  0x84   : > { %2439 = vmatmul.mubr.msk.bf16.gmra.mxu0 %vm593_vm1, %v2561_v42  ;;  %2457 = vmatmul.mubr.msk.bf16.gmra.mxu1 %vm593_vm1, %v2562_v43 }
  0x85   : > { %831 = vmatprep.mubr.bf16.mxu0 %v2967_v13  ;;  %1011 = vmatprep.mubr.bf16.mxu1 %v2967_v13 }
  0x8c   : > { %2440 = vmatmul.mubr.msk.bf16.gmra.mxu0 %vm593_vm1, %v2563_v44  ;;  %2458 = vmatmul.mubr.msk.bf16.gmra.mxu1 %vm593_vm1, %v2564_v45 }
  0x8d   : > { %841 = vmatprep.mubr.bf16.mxu0 %v2967_v13  ;;  %1021 = vmatprep.mubr.bf16.mxu1 %v2967_v13 }
  0x94   : > { %2441 = vmatmul.mubr.msk.bf16.gmra.mxu0 %vm593_vm1, %v2565_v46  ;;  %2459 = vmatmul.mubr.msk.bf16.gmra.mxu1 %vm593_vm1, %v2566_v47 }
  0x95   : > { %851 = vmatprep.mubr.bf16.mxu0 %v2967_v13  ;;  %1031 = vmatprep.mubr.bf16.mxu1 %v2967_v13 }
  0x9c   : > { %2442 = vmatmul.mubr.msk.bf16.gmra.mxu0 %vm593_vm1, %v2567_v48  ;;  %2460 = vmatmul.mubr.msk.bf16.gmra.mxu1 %vm593_vm1, %v2568_v49 }
  0x9d   : > { %861 = vmatprep.mubr.bf16.mxu0 %v2967_v13  ;;  %1041 = vmatprep.mubr.bf16.mxu1 %v2967_v13 }
  0xa4   : > { %2443 = vmatmul.mubr.msk.bf16.gmra.mxu0 %vm593_vm1, %v2569_v50  ;;  %2461 = vmatmul.mubr.msk.bf16.gmra.mxu1 %vm593_vm1, %v2570_v51 }
  0xa5   : > { %871 = vmatprep.mubr.bf16.mxu0 %v2967_v13  ;;  %1051 = vmatprep.mubr.bf16.mxu1 %v2967_v13 }
  0xac   : > { %2444 = vmatmul.mubr.msk.bf16.gmra.mxu0 %vm593_vm1, %v2571_v52  ;;  %2462 = vmatmul.mubr.msk.bf16.gmra.mxu1 %vm593_vm1, %v2572_v53 }
  0xad   : > { %881 = vmatprep.mubr.bf16.mxu0 %v2967_v13  ;;  %1061 = vmatprep.mubr.bf16.mxu1 %v2967_v13 }
  0xb4   : > { %2445 = vmatmul.mubr.msk.bf16.gmra.mxu0 %vm593_vm1, %v2573_v54  ;;  %2463 = vmatmul.mubr.msk.bf16.gmra.mxu1 %vm593_vm1, %v2574_v55 }
  0xb5   : > { %891 = vmatprep.mubr.bf16.mxu0 %v2967_v13  ;;  %1071 = vmatprep.mubr.bf16.mxu1 %v2967_v13 }
  0xbc   : > { %2446 = vmatmul.mubr.msk.bf16.gmra.mxu0 %vm593_vm1, %v2575_v56  ;;  %2464 = vmatmul.mubr.msk.bf16.gmra.mxu1 %vm593_vm1, %v2576_v57 }
  0xbd   : > { %901 = vmatprep.mubr.bf16.mxu0 %v2967_v13  ;;  %1081 = vmatprep.mubr.bf16.mxu1 %v2967_v13 }
  0xc4   : > { %2447 = vmatmul.mubr.msk.bf16.gmra.mxu0 %vm593_vm1, %v2577_v58  ;;  %2465 = vmatmul.mubr.msk.bf16.gmra.mxu1 %vm593_vm1, %v2578_v59 }
  0xc5   : > { %911 = vmatprep.mubr.bf16.mxu0 %v2967_v13  ;;  %1091 = vmatprep.mubr.bf16.mxu1 %v2967_v13 }
  0xcc   : > { %2448 = vmatmul.mubr.msk.bf16.gmra.mxu0 %vm593_vm1, %v2579_v60  ;;  %2466 = vmatmul.mubr.msk.bf16.gmra.mxu1 %vm593_vm1, %v2580_v61 }
 0x104   : > { %v3249_v62 = vpop.f32.mrf.mxu0  ;;  %v3251_v63 = vpop.f32.mrf.mxu1 }
 0x106   : > { %v3253_v0 = vpop.f32.mrf.mxu0  ;;  %v3255_v1 = vpop.f32.mrf.mxu1 }
 0x108   : > { %v3257_v2 = vpop.f32.mrf.mxu0  ;;  %v3259_v3 = vpop.f32.mrf.mxu1 }
 0x109   : > { %4590 = vst [vmem:[#allocation7_spill] sm:$0xff] %v3257_v2  ;;  %4591 = vst [vmem:[#allocation8_spill] sm:$0xff] %v3259_v3 }
 0x10a   : > { %v3261_v4 = vpop.f32.mrf.mxu0  ;;  %v3263_v5 = vpop.f32.mrf.mxu1 }
 0x10b   : > { %4592 = vst [vmem:[#allocation9_spill] sm:$0xff] %v3261_v4  ;;  %4593 = vst [vmem:[#allocation10_spill] sm:$0xff] %v3263_v5 }
 0x10c   : > { %v3265_v6 = vpop.f32.mrf.mxu0  ;;  %v3267_v7 = vpop.f32.mrf.mxu1 }
 0x10d   : > { %4594 = vst [vmem:[#allocation11_spill] sm:$0xff] %v3265_v6  ;;  %4595 = vst [vmem:[#allocation12_spill] sm:$0xff] %v3267_v7 }
 0x10e   : > { %v3269_v8 = vpop.f32.mrf.mxu0  ;;  %v3271_v9 = vpop.f32.mrf.mxu1 }
 0x10f   : > { %4596 = vst [vmem:[#allocation13_spill] sm:$0xff] %v3269_v8  ;;  %4597 = vst [vmem:[#allocation14_spill] sm:$0xff] %v3271_v9 }
 0x110   : > { %v3273_v10 = vpop.f32.mrf.mxu0  ;;  %v3275_v11 = vpop.f32.mrf.mxu1 }
 0x111   : > { %4598 = vst [vmem:[#allocation15_spill] sm:$0xff] %v3273_v10  ;;  %4599 = vst [vmem:[#allocation16_spill] sm:$0xff] %v3275_v11 }
 0x112   : > { %v3277_v12 = vpop.f32.mrf.mxu0  ;;  %v3279_v13 = vpop.f32.mrf.mxu1 }
 0x113   : > { %4600 = vst [vmem:[#allocation17_spill] sm:$0xff] %v3277_v12  ;;  %4601 = vst [vmem:[#allocation18_spill] sm:$0xff] %v3279_v13 }
 0x114   : > { %v3281_v14 = vpop.f32.mrf.mxu0  ;;  %v3283_v15 = vpop.f32.mrf.mxu1 }
 0x115   : > { %4602 = vst [vmem:[#allocation19_spill] sm:$0xff] %v3281_v14  ;;  %4603 = vst [vmem:[#allocation20_spill] sm:$0xff] %v3283_v15  ;;  %v1803_v15 = vlaneseq }
 0x116   : > { %v3285_v16 = vpop.f32.mrf.mxu0  ;;  %v3287_v17 = vpop.f32.mrf.mxu1 }
 0x117   : > { %4604 = vst [vmem:[#allocation21_spill] sm:$0xff] %v3287_v17 }
 0x118   : > { %v3289_v18 = vpop.f32.mrf.mxu0  ;;  %v3291_v19 = vpop.f32.mrf.mxu1 }
 0x119   : > { %4605 = vst [vmem:[#allocation22_spill] sm:$0xff] %v3289_v18  ;;  %4606 = vst [vmem:[#allocation23_spill] sm:$0xff] %v3291_v19 }
 0x11a   : > { %v3293_v20 = vpop.f32.mrf.mxu0  ;;  %v3295_v21 = vpop.f32.mrf.mxu1 }
 0x11b   : > { %4607 = vst [vmem:[#allocation24_spill] sm:$0xff] %v3293_v20  ;;  %4608 = vst [vmem:[#allocation25_spill] sm:$0xff] %v3295_v21 }
 0x11c   : > { %v3297_v22 = vpop.f32.mrf.mxu0  ;;  %v3299_v23 = vpop.f32.mrf.mxu1 }
 0x11d   : > { %4609 = vst [vmem:[#allocation26_spill] sm:$0xff] %v3297_v22  ;;  %4610 = vst [vmem:[#allocation27_spill] sm:$0xff] %v3299_v23 }
 0x11e   : > { %v3301_v24 = vpop.f32.mrf.mxu0  ;;  %v3303_v25 = vpop.f32.mrf.mxu1 }
 0x11f   : > { %4611 = vst [vmem:[#allocation28_spill] sm:$0xff] %v3301_v24  ;;  %4612 = vst [vmem:[#allocation29_spill] sm:$0xff] %v3303_v25 }
 0x120   : > { %v3305_v26 = vpop.f32.mrf.mxu0  ;;  %v3307_v27 = vpop.f32.mrf.mxu1 }
 0x121   : > { %4613 = vst [vmem:[#allocation30_spill] sm:$0xff] %v3305_v26  ;;  %4614 = vst [vmem:[#allocation31_spill] sm:$0xff] %v3307_v27 }
 0x122   : > { %v3309_v28 = vpop.f32.mrf.mxu0  ;;  %v3311_v29 = vpop.f32.mrf.mxu1 }
 0x123   : > { %4615 = vst [vmem:[#allocation32_spill] sm:$0xff] %v3309_v28  ;;  %4616 = vst [vmem:[#allocation33_spill] sm:$0xff] %v3311_v29 }
 0x124   : > { %v3313_v30 = vpop.f32.mrf.mxu0  ;;  %v3315_v31 = vpop.f32.mrf.mxu1 }
 0x126   : > { %v3317_v32 = vpop.f32.mrf.mxu0  ;;  %v3319_v33 = vpop.f32.mrf.mxu1 }
 0x127   : > { %4617 = vst [vmem:[#allocation34_spill] sm:$0xff] %v3317_v32  ;;  %4618 = vst [vmem:[#allocation35_spill] sm:$0xff] %v3319_v33 }
 0x128   : > { %v3321_v34 = vpop.f32.mrf.mxu0  ;;  %v3323_v35 = vpop.f32.mrf.mxu1 }
 0x129   : > { %4619 = vst [vmem:[#allocation36_spill] sm:$0xff] %v3321_v34  ;;  %4620 = vst [vmem:[#allocation37_spill] sm:$0xff] %v3323_v35 }
 0x12a   : > { %v3325_v36 = vpop.f32.mrf.mxu0  ;;  %v3327_v37 = vpop.f32.mrf.mxu1 }
 0x12b   : > { %4621 = vst [vmem:[#allocation38_spill] sm:$0xff] %v3325_v36  ;;  %4622 = vst [vmem:[#allocation39_spill] sm:$0xff] %v3327_v37 }
 0x12c   : > { %v3329_v38 = vpop.f32.mrf.mxu0  ;;  %v3331_v39 = vpop.f32.mrf.mxu1 }
 0x12d   : > { %4623 = vst [vmem:[#allocation40_spill] sm:$0xff] %v3329_v38  ;;  %4624 = vst [vmem:[#allocation41_spill] sm:$0xff] %v3331_v39 }
 0x12e   : > { %v3333_v40 = vpop.f32.mrf.mxu0  ;;  %v3335_v41 = vpop.f32.mrf.mxu1 }
 0x12f   : > { %4625 = vst [vmem:[#allocation42_spill] sm:$0xff] %v3333_v40  ;;  %4626 = vst [vmem:[#allocation43_spill] sm:$0xff] %v3335_v41 }
 0x130   : > { %v3337_v42 = vpop.f32.mrf.mxu0  ;;  %v3339_v43 = vpop.f32.mrf.mxu1 }
 0x131   : > { %4627 = vst [vmem:[#allocation44_spill] sm:$0xff] %v3337_v42  ;;  %4628 = vst [vmem:[#allocation45_spill] sm:$0xff] %v3339_v43 }
 0x132   : > { %v3341_v44 = vpop.f32.mrf.mxu0  ;;  %v3343_v45 = vpop.f32.mrf.mxu1 }
 0x133   : > { %4629 = vst [vmem:[#allocation46_spill] sm:$0xff] %v3341_v44  ;;  %4630 = vst [vmem:[#allocation47_spill] sm:$0xff] %v3343_v45 }
 0x134   : > { %v3345_v46 = vpop.f32.mrf.mxu0  ;;  %v3347_v47 = vpop.f32.mrf.mxu1 }
 0x135   : > { %4631 = vst [vmem:[#allocation48_spill] sm:$0xff] %v3345_v46  ;;  %4632 = vst [vmem:[#allocation49_spill] sm:$0xff] %v3347_v47 }
 0x136   : > { %v3349_v48 = vpop.f32.mrf.mxu0  ;;  %v3351_v49 = vpop.f32.mrf.mxu1 }
 0x137   : > { %4633 = vst [vmem:[#allocation50_spill] sm:$0xff] %v3349_v48  ;;  %4634 = vst [vmem:[#allocation51_spill] sm:$0xff] %v3351_v49 }
 0x138   : > { %v3353_v50 = vpop.f32.mrf.mxu0  ;;  %v3355_v51 = vpop.f32.mrf.mxu1 }
 0x139   : > { %4635 = vst [vmem:[#allocation52_spill] sm:$0xff] %v3353_v50  ;;  %4636 = vst [vmem:[#allocation53_spill] sm:$0xff] %v3355_v51 }
 0x13a   : > { %v3357_v52 = vpop.f32.mrf.mxu0  ;;  %v3359_v53 = vpop.f32.mrf.mxu1 }
 0x13b   : > { %4637 = vst [vmem:[#allocation54_spill] sm:$0xff] %v3357_v52  ;;  %4638 = vst [vmem:[#allocation55_spill] sm:$0xff] %v3359_v53 }
 0x13c   : > { %v3361_v54 = vpop.f32.mrf.mxu0  ;;  %v3363_v55 = vpop.f32.mrf.mxu1 }
 0x13d   : > { %4639 = vst [vmem:[#allocation56_spill] sm:$0xff] %v3361_v54  ;;  %4640 = vst [vmem:[#allocation57_spill] sm:$0xff] %v3363_v55 }
 0x13e   : > { %v3365_v56 = vpop.f32.mrf.mxu0  ;;  %v3367_v57 = vpop.f32.mrf.mxu1 }
 0x13f   : > { %4641 = vst [vmem:[#allocation58_spill] sm:$0xff] %v3365_v56  ;;  %4642 = vst [vmem:[#allocation59_spill] sm:$0xff] %v3367_v57 }
 0x140   : > { %v3369_v58 = vpop.f32.mrf.mxu0  ;;  %v3371_v59 = vpop.f32.mrf.mxu1 }
 0x141   : > { %4643 = vst [vmem:[#allocation60_spill] sm:$0xff] %v3369_v58  ;;  %4644 = vst [vmem:[#allocation61_spill] sm:$0xff] %v3371_v59 }
 0x142   : > { %v3373_v60 = vpop.f32.mrf.mxu0  ;;  %v3375_v61 = vpop.f32.mrf.mxu1 }
 0x143   : > { %4645 = vst [vmem:[#allocation62_spill] sm:$0xff] %v3373_v60  ;;  %4646 = vst [vmem:[#allocation63_spill] sm:$0xff] %v3375_v61 }
 0x144   : > { %v3377_v29 = vpop.f32.mrf.mxu0  ;;  %v3379_v27 = vpop.f32.mrf.mxu1 }
 0x145   : > { %4647 = vst [vmem:[#allocation64_spill] sm:$0xff] %v3379_v27 }
 0x146   : > { %v3381_v45 = vpop.f32.mrf.mxu0  ;;  %v3383_v13 = vpop.f32.mrf.mxu1 }
 0x147   : > { %4648 = vst [vmem:[#allocation65_spill] sm:$0xff] %v3381_v45  ;;  %4649 = vst [vmem:[#allocation66_spill] sm:$0xff] %v3383_v13  ;;  %v1804_v13 = vshrl.u32 %v1803_v15, 7 }
 0x148   : > { %v3385_v25 = vpop.f32.mrf.mxu0  ;;  %v3387_v43 = vpop.f32.mrf.mxu1 }
 0x149   : > { %4650 = vst [vmem:[#allocation67_spill] sm:$0xff] %v3385_v25  ;;  %4651 = vst [vmem:[#allocation68_spill] sm:$0xff] %v3387_v43  ;;  %v1865_v27 = vsub.s32 0, %v1804_v13 }
 0x14a   : > { %v3389_v57 = vpop.f32.mrf.mxu0  ;;  %v3391_v55 = vpop.f32.mrf.mxu1 }
 0x14b   : > { %4652 = vst [vmem:[#allocation69_spill] sm:$0xff] %v3389_v57  ;;  %4653 = vst [vmem:[#allocation70_spill] sm:$0xff] %v3391_v55  ;;  %v2968_v55 = vmov 1966171168  }
 0x14c   : > { %v3393_v59 = vpop.f32.mrf.mxu0  ;;  %v3395_v23 = vpop.f32.mrf.mxu1 }
 0x14d   : > { %4654 = vst [vmem:[#allocation71_spill] sm:$0xff] %v3393_v59  ;;  %4655 = vst [vmem:[#allocation72_spill] sm:$0xff] %v3395_v23 }
 0x14e   : > { %v3397_v61 = vpop.f32.mrf.mxu0  ;;  %v3399_v11 = vpop.f32.mrf.mxu1 }
 0x14f   : > { %4656 = vst [vmem:[#allocation73_spill] sm:$0xff] %v3397_v61  ;;  %4657 = vst [vmem:[#allocation74_spill] sm:$0xff] %v3399_v11 }
 0x150   : > { %v3401_v53 = vpop.f32.mrf.mxu0  ;;  %v3403_v21 = vpop.f32.mrf.mxu1 }
 0x151   : > { %4658 = vst [vmem:[#allocation75_spill] sm:$0xff] %v3401_v53  ;;  %4659 = vst [vmem:[#allocation76_spill] sm:$0xff] %v3403_v21  ;;  %v1801_v21 = vunpack.c.l.s4 %v2968_v55  ;;  %v2581_v55 = vld [vmem:[%s3097_s10] ss:$8 sps:$4 sm:$0xff]  }
 0x152   : > { %v3405_v51 = vpop.f32.mrf.mxu0  ;;  %v3407_v19 = vpop.f32.mrf.mxu1 }
 0x153   : > { %4660 = vst [vmem:[#allocation77_spill] sm:$0xff] %v3405_v51  ;;  %4661 = vst [vmem:[#allocation78_spill] sm:$0xff] %v3407_v19  ;;  %v1802_v39 = vunpack.c.0.s8 %v1801_v21  ;;  %v2583_v51 = vld [vmem:[%s3097_s10 + $0x4] ss:$8 sps:$4 sm:$0xff]  }
 0x154   : > { %v3409_v49 = vpop.f32.mrf.mxu0  ;;  %v3411_v17 = vpop.f32.mrf.mxu1 }
 0x155   : > { %4662 = vst [vmem:[#allocation79_spill] sm:$0xff] %v3411_v17  ;;  %v1805_v35 = vsub.s32 %v1802_v39, %v1804_v13 }
 0x156   : > { %v3413_v41 = vpop.f32.mrf.mxu0  ;;  %v3415_v47 = vpop.f32.mrf.mxu1 }
 0x157   : > { %4663 = vst [vmem:[#allocation80_spill] sm:$0xff] %v3415_v47  ;;  %v1806_v15 = vrot.slane %v2581_v55, %v1805_v35 }
 0x158   : > { %v3417_v23 = vpop.f32.mrf.mxu0  ;;  %v3419_v11 = vpop.f32.mrf.mxu1 }
 0x159   : > { %4664 = vst [vmem:[#allocation81_spill] sm:$0xff] %v3417_v23  ;;  %4665 = vst [vmem:[#allocation82_spill] sm:$0xff] %v3419_v11  ;;  %v1814_v39 = vcombine.high %v1806_v15, %v1806_v15 }
 0x15a   : > { %v3421_v9 = vpop.f32.mrf.mxu0  ;;  %v3423_v19 = vpop.f32.mrf.mxu1 }
 0x15b   : > { %4666 = vst [vmem:[#allocation83_spill] sm:$0xff] %v3421_v9  ;;  %4667 = vst [vmem:[#allocation84_spill] sm:$0xff] %v3423_v19 }
 0x15c   : > { %v3425_v43 = vpop.f32.mrf.mxu0  ;;  %v3427_v17 = vpop.f32.mrf.mxu1 }
 0x15d   : > { %4668 = vst [vmem:[#allocation85_spill] sm:$0xff] %v3425_v43  ;;  %4669 = vst [vmem:[#allocation86_spill] sm:$0xff] %v3427_v17  ;;  %v1813_v17 = vrot.slane %v2583_v51, %v1805_v35  ;;  %v1836_v51 = vrot.slane %v1814_v39, %v1805_v35 }
 0x15e   : > { %v3429_v47 = vpop.f32.mrf.mxu0  ;;  %v3431_v37 = vpop.f32.mrf.mxu1 }
 0x15f   : > { %4670 = vst [vmem:[#allocation87_spill] sm:$0xff] %v3429_v47  ;;  %4671 = vst [vmem:[#allocation88_spill] sm:$0xff] %v3431_v37  ;;  %v1815_v5 = vcombine.high %v1813_v17, %v1813_v17 }
 0x160   : > { %v3433_v7 = vpop.f32.mrf.mxu0  ;;  %v3435_v11 = vpop.f32.mrf.mxu1 }
 0x161   : > { %4672 = vst [vmem:[#allocation89_spill] sm:$0xff] %v3433_v7  ;;  %4673 = vst [vmem:[#allocation90_spill] sm:$0xff] %v3435_v11 }
 0x162   : > { %v3439_v53 = vpop.f32.mrf.mxu0  ;;  %v3441_v19 = vpop.f32.mrf.mxu1 }
 0x163   : > { %4674 = vst [vmem:[#allocation91_spill] sm:$0xff] %v3439_v53  ;;  %4675 = vst [vmem:[#allocation92_spill] sm:$0xff] %v3441_v19  ;;  %v2584_v19 = vld [vmem:[%s3097_s10 + $0x10] ss:$8 sps:$4 sm:$0x11]   ;;  %s2383_s10 = sshll.u32 %s3063_s17, 7 }
 0x164   : > { %v3443_v61 = vpop.f32.mrf.mxu0  ;;  %v3445_v21 = vpop.f32.mrf.mxu1  ;;  %s3858_s6 = scalar_lea.vmem [#allocation4], %s2383_s10 }
 0x165   : > { %4676 = vst [vmem:[#allocation93_spill] sm:$0xff] %v3443_v61  ;;  %4677 = vst [vmem:[#allocation94_spill] sm:$0xff] %v3445_v21  ;;  %v1822_v61 = vrot.slane %v1806_v15, %v1805_v35  ;;  %v1829_v21 = vrot.slane %v1813_v17, %v1805_v35  ;;  %v1166_v15 = vmax.f32 %v3281_v14, %v3345_v46  ;;  %s2287_s7 = sshll.u32 %s3858_s6, 4  ;;  %s4383_s7 = int_to_ptr.vmem [resolvable:$true] %s2287_s7 }
 0x166   : > { %v3447_v47 = vpop.f32.mrf.mxu0  ;;  %v3449_v37 = vpop.f32.mrf.mxu1  ;;  %s2905_s22 = scalar_lea.vmem %s4383_s7, 2048  ;;  %p2912_p2 = scmp.lt.s32.totalorder %s4383_s7, %s2910_s25 }
 0x167   : > { %4678 = vst [vmem:[#allocation95_spill] sm:$0xff] %v3447_v47  ;;  %4679 = vst [vmem:[#allocation96_spill] sm:$0xff] %v3449_v37  ;;  %v1843_v47 = vrot.slane %v1815_v5, %v1805_v35  ;;  %v1844_v57 = vcombine.high %v1822_v61, %v1822_v61  ;;  %p2906_p13 = scmp.ne.s32.totalorder %s4383_s7, %s2905_s22  ;;  %p2913_p3 = scmp.lt.s32.totalorder %s2911_s26, %s2905_s22 }
 0x168   : > { %v3451_v7 = vpop.f32.mrf.mxu0  ;;  %v3453_v11 = vpop.f32.mrf.mxu1 }
 0x169   : > { %4680 = vst [vmem:[#allocation97_spill] sm:$0xff] %v3451_v7  ;;  %4681 = vst [vmem:[#allocation98_spill] sm:$0xff] %v3453_v11  ;;  %v1855_v11 = vrot.slane %v2584_v19, %v1805_v35  ;;  %v3479_v19 = vrot.slane %v1822_v61, %v1865_v27  ;;  %p2907_p0 = pnand %p2906_p13, %p3035_p6  ;;  %p2914_p4 = por %p2913_p3, %p2912_p2 }
 0x16a   : > { %v3455_v33 = vpop.f32.mrf.mxu0  ;;  %v3457_v53 = vpop.f32.mrf.mxu1 }
 0x16b   : > { %4682 = vst [vmem:[#allocation99_spill] sm:$0xff] %v3455_v33  ;;  %4683 = vst [vmem:[#allocation100_spill] sm:$0xff] %v3457_v53  ;;  %v1846_v53 = vcombine.high %v1836_v51, %v1836_v51  ;;  %v1862_v17 = vrot.slane %v1855_v11, %v1805_v35  ;;  %v3495_v11 = vrot.slane %v1843_v47, %v1865_v27  ;;  %p2908_p1 = pneg %p2907_p0 }
 0x16c   : > { %v3460_v59 = vpop.f32.mrf.mxu0  ;;  %v3462_v55 = vpop.f32.mrf.mxu1  ;;  %4692 = vst [vmem:[#allocation109_spill] sm:$0xff] %v3479_v19  ;;  %v1182_v19 = vmax.f32 %v3289_v18, %v3353_v50  ;;  %v1190_v50 = vmax.f32 %v3293_v20, %v3357_v52 }
 0x16d   : > { %4684 = vst [vmem:[#allocation101_spill] sm:$0xff] %v3460_v59  ;;  %4685 = vst [vmem:[#allocation102_spill] sm:$0xff] %v3462_v55  ;;  %v1845_v59 = vcombine.high %v1829_v21, %v1829_v21  ;;  %v1847_v55 = vcombine.high %v1843_v47, %v1843_v47  ;;  %v3491_v14 = vrot.slane %v1846_v53, %v1865_v27  ;;  %p2915_p5 = pnand %p2914_p4, %p2908_p1 }
 0x16e   : > { %v3464_v37 = vpop.f32.mrf.mxu0  ;;  %v3466_v7 = vpop.f32.mrf.mxu1  ;;  %4697 = vst [vmem:[#allocation114_spill] sm:$0xff] %v3495_v11  ;;  %v3511_v11 = vrot.slane %v1862_v17, %v1865_v27 }
 0x16f   : > { %4686 = vst [vmem:[#allocation103_spill] sm:$0xff] %v3464_v37  ;;  %4687 = vst [vmem:[#allocation104_spill] sm:$0xff] %v3466_v7  ;;  %v1167_v7 = vmax.f32 %v1166_v15, %v3409_v49  ;;  %v3481_v37 = vrot.slane %v1836_v51, %v1865_v27  ;;  %v3498_v15 = vrot.slane %v1845_v59, %v1865_v27 }
 0x170   : > { %v3468_v25 = vpop.f32.mrf.mxu0  ;;  %v3470_v33 = vpop.f32.mrf.mxu1  ;;  %4695 = vst [vmem:[#allocation112_spill] sm:$0xff] %v3491_v14  ;;  %4700 = vst [vmem:[#allocation117_spill] sm:$0xff] %v3511_v11 }
 0x171   : > { %4688 = vst [vmem:[#allocation105_spill] sm:$0xff] %v3468_v25  ;;  %4689 = vst [vmem:[#allocation106_spill] sm:$0xff] %v3470_v33  ;;  %v3483_v25 = vrot.slane %v1844_v57, %v1865_v27  ;;  %v1174_v33 = vmax.f32 %v3285_v16, %v3349_v48 }
 0x172   : > { %v3474_v39 = vpop.f32.mrf.mxu0  ;;  %v3476_v5 = vpop.f32.mrf.mxu1  ;;  %4693 = vst [vmem:[#allocation110_spill] sm:$0xff] %v3481_v37  ;;  %4698 = vst [vmem:[#allocation115_spill] sm:$0xff] %v3498_v15  ;;  %v1102_v37 = vmax.f32 %v3249_v62, %v3313_v30 }
 0x173   : > { %4690 = vst [vmem:[#allocation107_spill] sm:$0xff] %v3474_v39  ;;  %4691 = vst [vmem:[#allocation108_spill] sm:$0xff] %v3476_v5  ;;  %v3493_v39 = vrot.slane %v1829_v21, %v1865_v27  ;;  %v3500_v5 = vrot.slane %v1847_v55, %v1865_v27  ;;  %v1175_v48 = vmax.f32 %v1174_v33, %v3413_v41 }
 0x174   : > { %4694 = vst [vmem:[#allocation111_spill] sm:$0xff] %v3483_v25  ;;  %v3487_v45 = vpop.f32.mrf.mxu0  ;;  %v3489_v46 = vpop.f32.mrf.mxu1  ;;  %v1869_v25 = vsub.s32 1, %v1804_v13  ;;  %v1118_v13 = vmax.f32 %v3257_v2, %v3321_v34  ;;  %v1134_v33 = vmax.f32 %v3265_v6, %v3329_v38  ;;  %v1183_v27 = vmax.f32 %v1182_v19, %v3417_v23  ;;  %v4746_v23 = vld [vmem:[#allocation41_spill] sm:$0xff] }
 0x175   : > { %4696 = vst [vmem:[#allocation113_spill] sm:$0xff] %v3493_v39  ;;  %v1168_v35 = vmax.f32 %v1167_v7, %v3487_v45  ;;  %4699 = vst [vmem:[#allocation116_spill] sm:$0xff] %v3500_v5  ;;  %v1110_v7 = vmax.f32 %v3253_v0, %v3317_v32  ;;  %v1126_v5 = vmax.f32 %v3261_v4, %v3325_v36 }
 0x176   : > { %v3507_v14 = vpop.f32.mrf.mxu0  ;;  %v3509_v39 = vpop.f32.mrf.mxu1  ;;  %v3530_v34 = vrot.slane %v1822_v61, %v1869_v25  ;;  %v3532_v2 = vrot.slane %v1836_v51, %v1869_v25  ;;  %v3534_v36 = vrot.slane %v1844_v57, %v1869_v25  ;;  %v1142_v38 = vmax.f32 %v3269_v8, %v3333_v40 }
 0x177   : > { %v1169_v15 = vmax.f32 %v1168_v35, %v3251_v63  ;;  %v1176_v18 = vmax.f32 %v1175_v48, %v3507_v14  ;;  %v3536_v35 = vrot.slane %v1846_v53, %v1869_v25  ;;  %v1198_v19 = vmax.f32 %v3297_v22, %v3361_v54 }
 0x178   : > { %v3526_v11 = vpop.f32.mrf.mxu0  ;;  %v3528_v32 = vpop.f32.mrf.mxu1  ;;  %v1191_v48 = vmax.f32 %v1190_v50, %v3421_v9  ;;  %v3549_v57 = vrot.slane %v1829_v21, %v1869_v25  ;;  %v3551_v53 = vrot.slane %v1843_v47, %v1869_v25  ;;  %v3553_v20 = vrot.slane %v1845_v59, %v1869_v25 }
 0x179   : > { %4701 = vst [vmem:[#allocation118_spill] sm:$0xff] %v3526_v11  ;;  %v1184_v6 = vmax.f32 %v1183_v27, %v3526_v11  ;;  %v1170_v51 = vmax.f32 %v1169_v15, %v3315_v31  ;;  %v1199_v40 = vmax.f32 %v1198_v19, %v3425_v43  ;;  %v1177_v8 = vmax.f32 %v1176_v18, %v3255_v1 }
 0x17a   : > { %v3544_v52 = vpop.f32.mrf.mxu0  ;;  %v3546_v61 = vpop.f32.mrf.mxu1  ;;  %v3562_v22 = vrot.slane %v1847_v55, %v1869_v25  ;;  %v1150_v21 = vmax.f32 %v3273_v10, %v3337_v42  ;;  %v1158_v47 = vmax.f32 %v3277_v12, %v3341_v44  ;;  %v1206_v59 = vmax.f32 %v3301_v24, %v3365_v56  ;;  %v4710_v12 = vld [vmem:[#allocation65_spill] sm:$0xff]  ;;  %v4712_v56 = vld [vmem:[#allocation64_spill] sm:$0xff] }
 0x17b   : > { %4702 = vst [vmem:[#allocation119_spill] sm:$0xff] %v3544_v52  ;;  %4703 = vst [vmem:[#allocation120_spill] sm:$0xff] %v3546_v61  ;;  %v1192_v50 = vmax.f32 %v1191_v48, %v3544_v52  ;;  %v3570_v15 = vrot.slane %v1862_v17, %v1869_v25  ;;  %v1214_v18 = vmax.f32 %v3305_v26, %v3369_v58  ;;  %v4711_v25 = vld [vmem:[#allocation67_spill] sm:$0xff]  ;;  %v4713_v26 = vld [vmem:[#allocation69_spill] sm:$0xff] }
 0x17c   : > { %v3558_v54 = vpop.f32.mrf.mxu0  ;;  %v3560_v27 = vpop.f32.mrf.mxu1  ;;  %4706 = vst [vmem:[#allocation123_spill] sm:$0xff] %v3562_v22  ;;  %v1222_v19 = vmax.f32 %v3309_v28, %v3373_v60  ;;  %v1185_v55 = vmax.f32 %v1184_v6, %v3259_v3  ;;  %v1103_v44 = vmax.f32 %v1102_v37, %v3377_v29  ;;  %v1111_v10 = vmax.f32 %v1110_v7, %v4710_v12  ;;  %v4714_v60 = vld [vmem:[#allocation71_spill] sm:$0xff]  ;;  %v4720_v7 = vld [vmem:[#allocation73_spill] sm:$0xff]  ;;  %v4747_v22 = vld [vmem:[#allocation68_spill] sm:$0xff] }
 0x17d   : > { %4704 = vst [vmem:[#allocation121_spill] sm:$0xff] %v3558_v54  ;;  %4705 = vst [vmem:[#allocation122_spill] sm:$0xff] %v3560_v27  ;;  %v1200_v48 = vmax.f32 %v1199_v40, %v3558_v54  ;;  %v3585_v17 = vmax.f32 %v1118_v13, %v4711_v25  ;;  %v1171_v58 = vmax.f32 %v1170_v51, %v4712_v56  ;;  %v4716_v40 = vld [vmem:[#allocation35_spill] sm:$0xff]  ;;  %v4717_v54 = vld [vmem:[#allocation10_spill] sm:$0xff] }
 0x17e   : > { %4707 = vst [vmem:[#allocation124_spill] sm:$0xff] %v3570_v15  ;;  %v3578_v43 = vpop.f32.mrf.mxu0  ;;  %v3580_v42 = vpop.f32.mrf.mxu1  ;;  %v3589_v24 = vmax.f32 %v1126_v5, %v4713_v26  ;;  %v3592_v6 = vmax.f32 %v1134_v33, %v4714_v60  ;;  %v1178_v28 = vmax.f32 %v1177_v8, %v4716_v40  ;;  %v1193_v27 = vmax.f32 %v1192_v50, %v4717_v54  ;;  %v4722_v13 = vld [vmem:[#allocation75_spill] sm:$0xff]  ;;  %v4724_v51 = vld [vmem:[#allocation77_spill] sm:$0xff]  ;;  %v4748_v25 = vld [vmem:[#allocation14_spill] sm:$0xff] }
 0x17f   : > { %4708 = vst [vmem:[#allocation125_spill] sm:$0xff] %v3578_v43  ;;  %4709 = vst [vmem:[#allocation126_spill] sm:$0xff] %v3580_v42  ;;  %v3601_v52 = vmax.f32 %v1142_v38, %v4720_v7  ;;  %v3604_v9 = vmax.f32 %v1150_v21, %v4722_v13  ;;  %v3607_v5 = vmax.f32 %v1158_v47, %v4724_v51  ;;  %v4726_v26 = vld [vmem:[#allocation87_spill] sm:$0xff]  ;;  %v4727_v60 = vld [vmem:[#allocation89_spill] sm:$0xff] }
 0x180   : > { %4715 = vst [vmem:[#allocation65_spill] sm:$0xff] %v3592_v6  ;;  %v3596_v42 = vpop.f32.mrf.mxu0  ;;  %v3598_v37 = vpop.f32.mrf.mxu1  ;;  %v1207_v33 = vmax.f32 %v1206_v59, %v4726_v26  ;;  %v3611_v4 = vmax.f32 %v1214_v18, %v4727_v60  ;;  %v4729_v8 = vld [vmem:[#allocation91_spill] sm:$0xff]  ;;  %v4731_v54 = vld [vmem:[#allocation37_spill] sm:$0xff]  ;;  %v4737_v26 = vld [vmem:[#allocation94_spill] sm:$0xff] }
 0x181   : > { %4718 = vst [vmem:[#allocation64_spill] sm:$0xff] %v3596_v42  ;;  %4719 = vst [vmem:[#allocation35_spill] sm:$0xff] %v3598_v37  ;;  %v3614_v50 = vmax.f32 %v1222_v19, %v4729_v8  ;;  %v1186_v61 = vmax.f32 %v1185_v55, %v4731_v54  ;;  %v4732_v37 = vld [vmem:[#allocation12_spill] sm:$0xff]  ;;  %v4735_v21 = vld [vmem:[#allocation93_spill] sm:$0xff]  ;;  %v1172_v18 = vmax.f32 %v1171_v58, %v4737_v26 }
 0x182   : > { %4721 = vst [vmem:[#allocation127_spill] sm:$0xff] %v3601_v52  ;;  %4723 = vst [vmem:[#allocation128_spill] sm:$0xff] %v3604_v9  ;;  %v1201_v3 = vmax.f32 %v1200_v48, %v4732_v37  ;;  %v3618_v38 = vpop.f32.mrf.mxu0  ;;  %v3620_v7 = vpop.f32.mrf.mxu1  ;;  %v1104_v13 = vmax.f32 %v1103_v44, %v4735_v21  ;;  %v4736_v47 = vld [vmem:[#allocation95_spill] sm:$0xff]  ;;  %v1208_v59 = vmax.f32 %v1207_v33, %v3578_v43  ;;  %v4738_v60 = vld [vmem:[#allocation97_spill] sm:$0xff] }
 0x183   : > { %4725 = vst [vmem:[#allocation129_spill] sm:$0xff] %v3607_v5  ;;  %4728 = vst [vmem:[#allocation130_spill] sm:$0xff] %v3611_v4  ;;  %v1112_v51 = vmax.f32 %v1111_v10, %v4736_v47  ;;  %v4739_v8 = vld [vmem:[#allocation99_spill] sm:$0xff]  ;;  %v4750_v54 = vld [vmem:[#allocation20_spill] sm:$0xff] }
 0x184   : > { %4730 = vst [vmem:[#allocation131_spill] sm:$0xff] %v3614_v50  ;;  %4733 = vst [vmem:[#allocation132_spill] sm:$0xff] %v3618_v38  ;;  %v4740_v50 = vld [vmem:[#allocation39_spill] sm:$0xff]  ;;  %v3631_v37 = vpop.f32.mrf.mxu0  ;;  %v3633_v38 = vpop.f32.mrf.mxu1  ;;  %v1202_v15 = vmax.f32 %v1201_v3, %v4746_v23  ;;  %v3651_v10 = vmax.f32 %v1208_v59, %v4748_v25  ;;  %v4752_v52 = vld [vmem:[#allocation48_spill] sm:$0xff] }
 0x185   : > { %4734 = vst [vmem:[#allocation133_spill] sm:$0xff] %v3620_v7  ;;  %v1194_v48 = vmax.f32 %v1193_v27, %v4740_v50  ;;  %v4741_v7 = vld [vmem:[#allocation66_spill] sm:$0xff]  ;;  %v1105_v43 = vmax.f32 %v1104_v13, %v3631_v37  ;;  %v1173_v19 = vmax.f32 %v1172_v18, %v3633_v38  ;;  %v4751_v33 = vld [vmem:[#allocation19_spill] sm:$0xff]  ;;  %v4753_v50 = vld [vmem:[#allocation96_spill] sm:$0xff] }
 0x186   : > { %v1179_v44 = vmax.f32 %v1178_v28, %v4741_v7  ;;  %v3648_v28 = vmax.f32 %v1186_v61, %v4747_v22  ;;  %4749 = vst [vmem:[#allocation93_spill] sm:$0xff] %v3651_v10  ;;  %v4754_v3 = vld [vmem:[#allocation70_spill] sm:$0xff]  ;;  %v4755_v61 = vld [vmem:[#allocation49_spill] sm:$0xff]  ;;  %v3667_v25 = vpop.f32.mrf.mxu0  ;;  %v3688_v6 = vpop.f32.mrf.mxu1 }
 0x187   : > { %v1106_v58 = vmax.f32 %v1105_v43, %v4750_v54  ;;  %v1238_v13 = vsub.f32 %v4751_v33, %v1173_v19  ;;  %v1254_v18 = vsub.f32 %v4752_v52, %v1173_v19  ;;  %v1270_v11 = vsub.f32 %v3409_v49, %v1173_v19  ;;  %v4758_v42 = vld [vmem:[#allocation98_spill] sm:$0xff] }
 0x188   : > { %v1180_v27 = vmax.f32 %v1179_v44, %v4753_v50  ;;  %v3661_v5 = vmax.f32 %v1194_v48, %v4754_v3  ;;  %v1286_v59 = vsub.f32 %v3487_v45, %v1173_v19  ;;  %v1302_v43 = vsub.f32 %v3251_v63, %v1173_v19  ;;  %v4757_v48 = vld [vmem:[#allocation79_spill] sm:$0xff]  ;;  %v4759_v45 = vld [vmem:[#allocation72_spill] sm:$0xff] }
 0x189   : > { %v1107_v9 = vmax.f32 %v1106_v58, %v4755_v61  ;;  %v1318_v33 = vsub.f32 %v3315_v31, %v1173_v19  ;;  %v1334_v52 = vsub.f32 %v4712_v56, %v1173_v19  ;;  %v1390_v55 = vmul.f32 1.442695, %v1238_v13  ;;  %v4761_v56 = vld [vmem:[#allocation100_spill] sm:$0xff] }
 0x18a   : > { %v1422_v23 = vmul.f32 1.442695, %v1254_v18  ;;  %v1454_v49 = vmul.f32 1.442695, %v1270_v11  ;;  %v1188_v58 = vmax.f32 %v3648_v28, %v4758_v42  ;;  %v3676_v4 = vmax.f32 %v1202_v15, %v4759_v45 }
 0x18b   : > { %v1108_v3 = vmax.f32 %v1107_v9, %v4757_v48  ;;  %v1350_v63 = vsub.f32 %v4737_v26, %v1173_v19  ;;  %2585 = vpow2.f32 %v1390_v55  ;;  %v1113_v31 = vmax.f32 %v1112_v51, %v3667_v25  ;;  %v3690_v26 = vpop.f32.mrf.mxu0 }
 0x18c   : > { %4760 = vst [vmem:[#allocation95_spill] sm:$0xff] %v3676_v4  ;;  %v1366_v18 = vsub.f32 %v3633_v38, %v1173_v19  ;;  %2587 = vpow2.f32 %v1422_v23  ;;  %v1486_v9 = vmul.f32 1.442695, %v1286_v59  ;;  %v1518_v44 = vmul.f32 1.442695, %v1302_v43  ;;  %v4762_v43 = vld [vmem:[#allocation21_spill] sm:$0xff] }
 0x18d   : > { %v1109_v11 = vmax.f32 %v1108_v3, %v3489_v46  ;;  %2589 = vpow2.f32 %v1454_v49  ;;  %v3684_v28 = vmul.f32 1.442695, %v1318_v33  ;;  %v3686_v15 = vmul.f32 1.442695, %v1334_v52 }
 0x18e   : > { %v3698_v59 = vmul.f32 1.442695, %v1350_v63  ;;  %v1114_v33 = vmax.f32 %v1113_v31, %v4762_v43  ;;  %2591 = vpow2.f32 %v1486_v9  ;;  %v1646_v31 = vmul.f32 1.442695, %v1366_v18  ;;  %v4767_v18 = vld [vmem:[#allocation80_spill] sm:$0xff] }
 0x18f   : > { %v1230_v51 = vsub.f32 %v3249_v62, %v1109_v11  ;;  %v1246_v55 = vsub.f32 %v3313_v30, %v1109_v11  ;;  %v1262_v3 = vsub.f32 %v3377_v29, %v1109_v11  ;;  %v1278_v38 = vsub.f32 %v4735_v21, %v1109_v11  ;;  %v3706_v21 = vpop.f32.mrf.mxu1 }
 0x190   : > { %v1294_v23 = vsub.f32 %v3631_v37, %v1109_v11  ;;  %v1310_v19 = vsub.f32 %v4750_v54, %v1109_v11  ;;  %v1326_v52 = vsub.f32 %v4755_v61, %v1109_v11  ;;  %v1342_v62 = vsub.f32 %v4757_v48, %v1109_v11  ;;  %v3708_v37 = vpop.f32.mrf.mxu0 }
 0x191   : > { %v1374_v49 = vmul.f32 1.442695, %v1230_v51  ;;  %v1406_v13 = vmul.f32 1.442695, %v1246_v55  ;;  %v1438_v10 = vmul.f32 1.442695, %v1262_v3  ;;  %v3704_v29 = vmax.f32 %v1180_v27, %v3688_v6 }
 0x192   : > { %v1470_v30 = vmul.f32 1.442695, %v1278_v38  ;;  %4763 = vst [vmem:[#allocation94_spill] sm:$0xff] %v3708_v37  ;;  %v1358_v54 = vsub.f32 %v3489_v46, %v1109_v11  ;;  %v1502_v63 = vmul.f32 1.442695, %v1294_v23  ;;  %v4764_v51 = vld [vmem:[#allocation51_spill] sm:$0xff]  ;;  %v4765_v48 = vmax.f32 %v3585_v17, %v4738_v60 }
 0x193   : > { %2593 = vpow2.f32 %v1374_v49  ;;  %v1534_v61 = vmul.f32 1.442695, %v1310_v19  ;;  %v1115_v55 = vmax.f32 %v1114_v33, %v4764_v51  ;;  %v1566_v27 = vmul.f32 1.442695, %v1326_v52 }
 0x194   : > { %2595 = vpow2.f32 %v1406_v13  ;;  %v3716_v9 = vmax.f32 %v4765_v48, %v3690_v26  ;;  %v3719_v3 = vmax.f32 %v1188_v58, %v3706_v21  ;;  %v4766_v46 = vmax.f32 %v3589_v24, %v4739_v8  ;;  %v4770_v48 = vld [vmem:[#allocation110_spill] sm:$0xff] }
 0x195   : > { %2597 = vpow2.f32 %v1438_v10  ;;  %v1598_v13 = vmul.f32 1.442695, %v1342_v62  ;;  %v1116_v38 = vmax.f32 %v1115_v55, %v4767_v18  ;;  %v1239_v17 = vsub.f32 %v3285_v16, %v3704_v29  ;;  %v4768_v10 = vld [vmem:[#allocation50_spill] sm:$0xff] }
 0x196   : > { %v3725_v11 = vmax.f32 %v4766_v46, %v3708_v37  ;;  %2599 = vpow2.f32 %v1470_v30  ;;  %v1630_v23 = vmul.f32 1.442695, %v1358_v54  ;;  %v1255_v19 = vsub.f32 %v4768_v10, %v3704_v29 }
 0x197   : > { %2601 = vpow2.f32 %v1502_v63  ;;  %v3735_v24 = vmax.f32 %v1116_v38, %v3509_v39  ;;  %v1271_v33 = vsub.f32 %v3413_v41, %v3704_v29  ;;  %v1287_v52 = vsub.f32 %v3507_v14, %v3704_v29  ;;  %v4769_v63 = vld [vmem:[#allocation109_spill] sm:$0xff] }
 0x198   : > { %2603 = vpow2.f32 %v1534_v61  ;;  %v2586_v49 = vpop.eup %2585  ;;  %v1303_v16 = vsub.f32 %v3255_v1, %v3704_v29  ;;  %v1319_v62 = vsub.f32 %v4716_v40, %v3704_v29  ;;  %v3750_v55 = vmul.f32 1.442695, %v1239_v17  ;;  %v4771_v40 = vld [vmem:[#allocation34_spill] sm:$0xff] }
 0x199   : > { %2605 = vpow2.f32 %v1566_v27  ;;  %v2588_v54 = vpop.eup %2587  ;;  %v1961_v61 = vmul.f32 %v2586_v49, %v4769_v63  ;;  %v1231_v1 = vsub.f32 %v3253_v0, %v3735_v24  ;;  %v1247_v46 = vsub.f32 %v4771_v40, %v3735_v24  ;;  %v4772_v0 = vld [vmem:[#allocation111_spill] sm:$0xff] }
 0x19a   : > { %2607 = vpow2.f32 %v1598_v13  ;;  %v2590_v14 = vpop.eup %2589  ;;  %v1977_v27 = vmul.f32 %v2588_v54, %v4770_v48  ;;  %v1726_v38 = vadd.f32 %v2588_v54, %v2586_v49  ;;  %v1263_v13 = vsub.f32 %v4710_v12, %v3735_v24 }
 0x19b   : > { %2609 = vpow2.f32 %v1630_v23  ;;  %v3759_v10 = vmul.f32 1.442695, %v1255_v19  ;;  %v1279_v17 = vsub.f32 %v4736_v47, %v3735_v24  ;;  %v3764_v23 = vmul.f32 1.442695, %v1271_v33  ;;  %v2592_v12 = vpop.eup %2591 }
 0x19c   : > { %2611 = vpow2.f32 %v1518_v44  ;;  %v3766_v41 = vmul.f32 1.442695, %v1287_v52  ;;  %v1993_v40 = vmul.f32 %v2590_v14, %v4772_v0  ;;  %v1295_v44 = vsub.f32 %v3667_v25, %v3735_v24 }
 0x19d   : > { %2613 = vpow2.f32 %v3684_v28  ;;  %v3772_v49 = vmul.f32 1.442695, %v1303_v16  ;;  %v2161_v28 = vadd.f32 %v1977_v27, %v1961_v61  ;;  %v1376_v19 = vmul.f32 1.442695, %v1231_v1 }
 0x19e   : > { %2615 = vpow2.f32 %v3686_v15  ;;  %v1408_v54 = vmul.f32 1.442695, %v1247_v46  ;;  %v1727_v33 = vadd.f32 %v2590_v14, %v1726_v38  ;;  %v1311_v52 = vsub.f32 %v4762_v43, %v3735_v24 }
 0x19f   : > { %2617 = vpow2.f32 %v3698_v59  ;;  %v1440_v15 = vmul.f32 1.442695, %v1263_v13  ;;  %v1327_v25 = vsub.f32 %v4764_v51, %v3735_v24  ;;  %v1472_v16 = vmul.f32 1.442695, %v1279_v17 }
 0x1a0   : > { %v2594_v47 = vpop.eup %2593  ;;  %2619 = vpow2.f32 %v1646_v31  ;;  %v1343_v31 = vsub.f32 %v4767_v18, %v3735_v24  ;;  %v2162_v27 = vadd.f32 %v2161_v28, %v1993_v40  ;;  %v1359_v43 = vsub.f32 %v3509_v39, %v3735_v24 }
 0x1a1   : > { %v2596_v58 = vpop.eup %2595  ;;  %v1953_v30 = vmul.f32 %v2594_v47, %v4769_v63  ;;  %2621 = vpow2.f32 %v1376_v19  ;;  %v1504_v1 = vmul.f32 1.442695, %v1295_v44  ;;  %v1536_v17 = vmul.f32 1.442695, %v1311_v52 }
 0x1a2   : > { %v2598_v45 = vpop.eup %2597  ;;  %v1662_v59 = vadd.f32 %v2596_v58, %v2594_v47  ;;  %v1969_v61 = vmul.f32 %v2596_v58, %v4770_v48  ;;  %2623 = vpow2.f32 %v1408_v54  ;;  %v4773_v47 = vld [vmem:[#allocation112_spill] sm:$0xff]  ;;  %v1568_v37 = vmul.f32 1.442695, %v1327_v25 }
 0x1a3   : > { %v2600_v14 = vpop.eup %2599  ;;  %2625 = vpow2.f32 %v1440_v15  ;;  %v1985_v51 = vmul.f32 %v2598_v45, %v4772_v0  ;;  %v2009_v58 = vmul.f32 %v2592_v12, %v4773_v47  ;;  %v3787_v18 = vmul.f32 1.442695, %v1319_v62  ;;  %v4774_v15 = vld [vmem:[#allocation113_spill] sm:$0xff]  ;;  %v4775_v62 = vld [vmem:[#allocation114_spill] sm:$0xff]  ;;  %v4776_v0 = vld [vmem:[#allocation115_spill] sm:$0xff] }
 0x1a4   : > { %v2602_v46 = vpop.eup %2601  ;;  %v1663_v38 = vadd.f32 %v2598_v45, %v1662_v59  ;;  %v2097_v13 = vadd.f32 %v1969_v61, %v1953_v30  ;;  %2627 = vpow2.f32 %v1472_v16  ;;  %v2001_v28 = vmul.f32 %v2600_v14, %v4773_v47 }
 0x1a5   : > { %v2604_v19 = vpop.eup %2603  ;;  %v1728_v24 = vadd.f32 %v2592_v12, %v1727_v33  ;;  %v2017_v59 = vmul.f32 %v2602_v46, %v4774_v15  ;;  %v2163_v8 = vadd.f32 %v2162_v27, %v2009_v58  ;;  %2629 = vpow2.f32 %v1504_v1  ;;  %v4780_v58 = vld [vmem:[#allocation53_spill] sm:$0xff] }
 0x1a6   : > { %v2606_v54 = vpop.eup %2605  ;;  %v1664_v40 = vadd.f32 %v2600_v14, %v1663_v38  ;;  %v2098_v39 = vadd.f32 %v2097_v13, %v1985_v51  ;;  %v1600_v45 = vmul.f32 1.442695, %v1343_v31  ;;  %2631 = vpow2.f32 %v1536_v17  ;;  %v4777_v14 = vld [vmem:[#allocation23_spill] sm:$0xff] }
 0x1a7   : > { %v2608_v44 = vpop.eup %2607  ;;  %v1632_v16 = vmul.f32 1.442695, %v1359_v43  ;;  %v2033_v4 = vmul.f32 %v2604_v19, %v4775_v62  ;;  %v2049_v38 = vmul.f32 %v2606_v54, %v4776_v0  ;;  %2633 = vpow2.f32 %v1568_v37 }
 0x1a8   : > { %v2610_v30 = vpop.eup %2609  ;;  %v1665_v52 = vadd.f32 %v2602_v46, %v1664_v40  ;;  %v2099_v61 = vadd.f32 %v2098_v39, %v2001_v28  ;;  %v1122_v12 = vmax.f32 %v3716_v9, %v4777_v14  ;;  %v4778_v31 = vsub.f32 %v4741_v7, %v3704_v29  ;;  %v4781_v7 = vld [vmem:[#allocation116_spill] sm:$0xff] }
 0x1a9   : > { %v2612_v25 = vpop.eup %2611  ;;  %2635 = vpow2.f32 %v3750_v55  ;;  %v4779_v17 = vsub.f32 %v4753_v50, %v3704_v29 }
 0x1aa   : > { %v2614_v33 = vpop.eup %2613  ;;  %v1666_v51 = vadd.f32 %v2604_v19, %v1665_v52  ;;  %v2100_v13 = vadd.f32 %v2099_v61, %v2017_v59  ;;  %v1729_v27 = vadd.f32 %v2612_v25, %v1728_v24  ;;  %v1584_v1 = vmul.f32 1.442695, %v4778_v31 }
 0x1ab   : > { %v2616_v46 = vpop.eup %2615  ;;  %v2025_v43 = vmul.f32 %v2612_v25, %v4774_v15  ;;  %v3803_v37 = vmul.f32 1.442695, %v4779_v17  ;;  %v1123_v9 = vmax.f32 %v1122_v12, %v4780_v58  ;;  %2637 = vpow2.f32 %v1600_v45 }
 0x1ac   : > { %v2618_v40 = vpop.eup %2617  ;;  %v1667_v19 = vadd.f32 %v2606_v54, %v1666_v51  ;;  %v2101_v28 = vadd.f32 %v2100_v13, %v2033_v4  ;;  %v1730_v39 = vadd.f32 %v2614_v33, %v1729_v27  ;;  %v2065_v59 = vmul.f32 %v2608_v44, %v4781_v7  ;;  %v4782_v54 = vld [vmem:[#allocation82_spill] sm:$0xff] }
 0x1ad   : > { %v2620_v24 = vpop.eup %2619  ;;  %v2041_v52 = vmul.f32 %v2614_v33, %v4775_v62  ;;  %v2164_v61 = vadd.f32 %v2163_v8, %v2025_v43  ;;  %2639 = vpow2.f32 %v3759_v10  ;;  %v2057_v17 = vmul.f32 %v2616_v46, %v4776_v0 }
 0x1ae   : > { %v2622_v55 = vpop.eup %2621  ;;  %v1668_v25 = vadd.f32 %v2608_v44, %v1667_v19  ;;  %v2102_v50 = vadd.f32 %v2101_v28, %v2049_v38  ;;  %v1731_v31 = vadd.f32 %v2616_v46, %v1730_v39  ;;  %2641 = vpow2.f32 %v3764_v23  ;;  %v4783_v23 = vld [vmem:[#allocation117_spill] sm:$0xff] }
 0x1af   : > { %v2624_v12 = vpop.eup %2623  ;;  %v2165_v15 = vadd.f32 %v2164_v61, %v2041_v52  ;;  %v1954_v4 = vmul.f32 %v2622_v55, %v3530_v34  ;;  %v1124_v45 = vmax.f32 %v1123_v9, %v4782_v54  ;;  %2643 = vpow2.f32 %v1632_v16 }
 0x1b0   : > { %v2626_v51 = vpop.eup %2625  ;;  %v1669_v13 = vadd.f32 %v2610_v30, %v1668_v25  ;;  %v1732_v33 = vadd.f32 %v2618_v40, %v1731_v31  ;;  %v1670_v8 = vadd.f32 %v2624_v12, %v2622_v55  ;;  %v2073_v10 = vmul.f32 %v2618_v40, %v4781_v7 }
 0x1b1   : > { %v2166_v44 = vadd.f32 %v2165_v15, %v2057_v17  ;;  %v1970_v38 = vmul.f32 %v2624_v12, %v3532_v2  ;;  %2645 = vpow2.f32 %v3766_v41  ;;  %v2628_v27 = vpop.eup %2627  ;;  %v2103_v46 = vadd.f32 %v2102_v50, %v2065_v59 }
 0x1b2   : > { %2647 = vrcp.f32 %v1669_v13  ;;  %v1733_v43 = vadd.f32 %v2620_v24, %v1732_v33  ;;  %v1671_v19 = vadd.f32 %v2626_v51, %v1670_v8  ;;  %v2081_v28 = vmul.f32 %v2610_v30, %v4783_v23  ;;  %v2630_v52 = vpop.eup %2629  ;;  %v4785_v30 = vld [vmem:[#allocation22_spill] sm:$0xff] }
 0x1b3   : > { %v1986_v9 = vmul.f32 %v2626_v51, %v3534_v36  ;;  %v2105_v39 = vadd.f32 %v1970_v38, %v1954_v4  ;;  %v3819_v16 = vmax.f32 %v1124_v45, %v3528_v32  ;;  %v2167_v40 = vadd.f32 %v2166_v44, %v2073_v10  ;;  %v2632_v59 = vpop.eup %2631  ;;  %v4787_v38 = vld [vmem:[#allocation36_spill] sm:$0xff] }
 0x1b4   : > { %2649 = vrcp.f32 %v1733_v43  ;;  %v1672_v15 = vadd.f32 %v2628_v27, %v1671_v19  ;;  %v4784_v41 = vsub.f32 %v3688_v6, %v3704_v29  ;;  %v2002_v55 = vmul.f32 %v2628_v27, %v3536_v35  ;;  %v2634_v31 = vpop.eup %2633  ;;  %v4786_v29 = vld [vmem:[#allocation7_spill] sm:$0xff] }
 0x1b5   : > { %v2106_v25 = vadd.f32 %v2105_v39, %v1986_v9  ;;  %2651 = vpow2.f32 %v3772_v49  ;;  %v1240_v50 = vsub.f32 %v4785_v30, %v3719_v3  ;;  %v2104_v17 = vadd.f32 %v2103_v46, %v2081_v28  ;;  %v4788_v43 = vld [vmem:[#allocation67_spill] sm:$0xff] }
 0x1b6   : > { %v1648_v61 = vmul.f32 1.442695, %v4784_v41  ;;  %v2089_v12 = vmul.f32 %v2620_v24, %v4783_v23  ;;  %v1673_v4 = vadd.f32 %v2630_v52, %v1672_v15  ;;  %2653 = vpow2.f32 %v3787_v18  ;;  %v2636_v13 = vpop.eup %2635 }
 0x1b7   : > { %v2018_v45 = vmul.f32 %v2630_v52, %v3549_v57  ;;  %v2107_v6 = vadd.f32 %v2106_v25, %v2002_v55  ;;  %2655 = vpow2.f32 %v1584_v1  ;;  %v1232_v51 = vsub.f32 %v4786_v29, %v3819_v16 }
 0x1b8   : > { %v2168_v33 = vadd.f32 %v2167_v40, %v2089_v12  ;;  %v1674_v49 = vadd.f32 %v2632_v59, %v1673_v4  ;;  %v2034_v8 = vmul.f32 %v2632_v59, %v3551_v53  ;;  %2657 = vpow2.f32 %v3803_v37  ;;  %v2638_v10 = vpop.eup %2637 }
 0x1b9   : > { %v2050_v24 = vmul.f32 %v2634_v31, %v3553_v20  ;;  %v2108_v44 = vadd.f32 %v2107_v6, %v2018_v45  ;;  %v1962_v18 = vmul.f32 %v2636_v13, %v3530_v34  ;;  %v1248_v27 = vsub.f32 %v4787_v38, %v3819_v16 }
 0x1ba   : > { %v2640_v1 = vpop.eup %2639  ;;  %v1675_v46 = vadd.f32 %v2634_v31, %v1674_v49  ;;  %2659 = vpow2.f32 %v1648_v61  ;;  %v1264_v19 = vsub.f32 %v4788_v43, %v3819_v16  ;;  %v1280_v28 = vsub.f32 %v4738_v60, %v3819_v16 }
 0x1bb   : > { %v2109_v37 = vadd.f32 %v2108_v44, %v2034_v8  ;;  %v1734_v9 = vadd.f32 %v2640_v1, %v2636_v13  ;;  %v1978_v39 = vmul.f32 %v2640_v1, %v3532_v2  ;;  %v1378_v52 = vmul.f32 1.442695, %v1232_v51  ;;  %v2642_v40 = vpop.eup %2641 }
 0x1bc   : > { %v1676_v15 = vadd.f32 %v2638_v10, %v1675_v46  ;;  %v1296_v41 = vsub.f32 %v3690_v26, %v3819_v16  ;;  %v1312_v61 = vsub.f32 %v4777_v14, %v3819_v16  ;;  %v1328_v59 = vsub.f32 %v4780_v58, %v3819_v16  ;;  %v2644_v55 = vpop.eup %2643  ;;  %v4789_v58 = vld [vmem:[#allocation123_spill] sm:$0xff] }
 0x1bd   : > { %v1735_v25 = vadd.f32 %v2642_v40, %v1734_v9  ;;  %v1994_v60 = vmul.f32 %v2642_v40, %v3534_v36  ;;  %v2169_v31 = vadd.f32 %v1978_v39, %v1962_v18  ;;  %v1410_v12 = vmul.f32 1.442695, %v1248_v27 }
 0x1be   : > { %v2646_v4 = vpop.eup %2645  ;;  %v1677_v45 = vadd.f32 %v2644_v55, %v1676_v15  ;;  %v2110_v6 = vadd.f32 %v2109_v37, %v2050_v24  ;;  %2661 = vpow2.f32 %v1378_v52  ;;  %v1442_v29 = vmul.f32 1.442695, %v1264_v19  ;;  %v4791_v52 = vld [vmem:[#allocation52_spill] sm:$0xff]  ;;  %v4792_v15 = vld [vmem:[#allocation81_spill] sm:$0xff] }
 0x1bf   : > { %v2648_v51 = vpop.eup %2647  ;;  %v1736_v26 = vadd.f32 %v2646_v4, %v1735_v25  ;;  %v2010_v13 = vmul.f32 %v2646_v4, %v3536_v35  ;;  %v2170_v14 = vadd.f32 %v2169_v31, %v1994_v60  ;;  %v1474_v49 = vmul.f32 1.442695, %v1280_v28 }
 0x1c0   : > { %v2241_v8 = vmul.f32 %v2648_v51, %v2104_v17  ;;  %v2066_v44 = vmul.f32 %v2638_v10, %v4789_v58  ;;  %2663 = vrcp.f32 %v1677_v45  ;;  %v1344_v18 = vsub.f32 %v4782_v54, %v3819_v16 }
 0x1c1   : > { %v2650_v38 = vpop.eup %2649  ;;  %v2171_v27 = vadd.f32 %v2170_v14, %v2010_v13  ;;  %v1360_v24 = vsub.f32 %v3528_v32, %v3819_v16  ;;  %2665 = vpow2.f32 %v1410_v12  ;;  %v1506_v1 = vmul.f32 1.442695, %v1296_v41  ;;  %v4790_v32 = vld [vmem:[#allocation124_spill] sm:$0xff]  ;;  %v4793_v12 = vld [vmem:[#allocation118_spill] sm:$0xff] }
 0x1c2   : > { %v2652_v46 = vpop.eup %2651  ;;  %2257 = vst [vmem:[%s3858_s6] sm:$0xff] %v2241_v8  ;;  %v2249_v17 = vmul.f32 %v2650_v38, %v2168_v33  ;;  %v2111_v43 = vadd.f32 %v2110_v6, %v2066_v44  ;;  %2667 = vpow2.f32 %v1442_v29  ;;  %v1538_v10 = vmul.f32 1.442695, %v1312_v61  ;;  %v4795_v38 = vld [vmem:[#allocation37_spill] sm:$0xff] }
 0x1c3   : > { %v2654_v19 = vpop.eup %2653  ;;  %v1737_v28 = vadd.f32 %v2652_v46, %v1736_v26  ;;  %v2026_v54 = vmul.f32 %v2652_v46, %v3549_v57  ;;  %2669 = vpow2.f32 %v1474_v49  ;;  %v1570_v37 = vmul.f32 1.442695, %v1328_v59  ;;  %v4794_v26 = vld [vmem:[#allocation8_spill] sm:$0xff] }
 0x1c4   : > { %v2656_v9 = vpop.eup %2655  ;;  %2265 = vst [vmem:[%s3858_s6 + $0x40] sm:$0xff] %v2249_v17  ;;  %v2082_v16 = vmul.f32 %v2644_v55, %v4790_v32  ;;  %v1602_v39 = vmul.f32 1.442695, %v1344_v18  ;;  %v1256_v40 = vsub.f32 %v4791_v52, %v3719_v3  ;;  %v1272_v33 = vsub.f32 %v4792_v15, %v3719_v3 }
 0x1c5   : > { %v2658_v41 = vpop.eup %2657  ;;  %v1738_v25 = vadd.f32 %v2654_v19, %v1737_v28  ;;  %v2042_v61 = vmul.f32 %v2654_v19, %v3551_v53  ;;  %v2172_v60 = vadd.f32 %v2171_v27, %v2026_v54  ;;  %2671 = vpow2.f32 %v1506_v1  ;;  %v4796_v19 = vld [vmem:[#allocation25_spill] sm:$0xff] }
 0x1c6   : > { %v2112_v31 = vadd.f32 %v2111_v43, %v2082_v16  ;;  %2673 = vpow2.f32 %v1538_v10  ;;  %v1634_v59 = vmul.f32 1.442695, %v1360_v24  ;;  %v1288_v4 = vsub.f32 %v4793_v12, %v3719_v3  ;;  %v3892_v16 = vpop.f32.mrf.mxu1 }
 0x1c7   : > { %v2660_v55 = vpop.eup %2659  ;;  %v1739_v45 = vadd.f32 %v2656_v9, %v1738_v25  ;;  %v2058_v6 = vmul.f32 %v2656_v9, %v3553_v20  ;;  %v2173_v29 = vadd.f32 %v2172_v60, %v2042_v61  ;;  %2675 = vpow2.f32 %v1570_v37  ;;  %v4800_v25 = vld [vmem:[#allocation64_spill] sm:$0xff] }
 0x1c8   : > { %v2074_v51 = vmul.f32 %v2658_v41, %v4789_v58  ;;  %v1304_v13 = vsub.f32 %v4794_v26, %v3719_v3  ;;  %v1394_v14 = vmul.f32 1.442695, %v1240_v50  ;;  %v1426_v49 = vmul.f32 1.442695, %v1256_v40  ;;  %v4797_v40 = vld [vmem:[#allocation55_spill] sm:$0xff] }
 0x1c9   : > { %v1740_v8 = vadd.f32 %v2658_v41, %v1739_v45  ;;  %v2174_v44 = vadd.f32 %v2173_v29, %v2058_v6  ;;  %2677 = vpow2.f32 %v1602_v39  ;;  %v1458_v18 = vmul.f32 1.442695, %v1272_v33  ;;  %v4799_v41 = vld [vmem:[#allocation130_spill] sm:$0xff]  ;;  %v3910_v29 = vpop.f32.mrf.mxu0  ;;  %v4804_v26 = vld [vmem:[#allocation111_spill] sm:$0xff] }
 0x1ca   : > { %v1320_v27 = vsub.f32 %v4795_v38, %v3719_v3  ;;  %v1336_v24 = vsub.f32 %v4747_v22, %v3719_v3  ;;  %2679 = vpow2.f32 %v1394_v14  ;;  %v1490_v1 = vmul.f32 1.442695, %v1288_v4  ;;  %v4806_v38 = vld [vmem:[#allocation102_spill] sm:$0xff] }
 0x1cb   : > { %v2662_v46 = vpop.eup %2661  ;;  %v1741_v17 = vadd.f32 %v2660_v55, %v1740_v8  ;;  %v2090_v43 = vmul.f32 %v2660_v55, %v4790_v32  ;;  %v2175_v10 = vadd.f32 %v2174_v44, %v2074_v51  ;;  %2681 = vpow2.f32 %v1426_v49  ;;  %v4805_v44 = vld [vmem:[#allocation120_spill] sm:$0xff] }
 0x1cc   : > { %v1352_v30 = vsub.f32 %v4758_v42, %v3719_v3  ;;  %2683 = vpow2.f32 %v1458_v18  ;;  %v1522_v50 = vmul.f32 1.442695, %v1304_v13  ;;  %v1130_v28 = vmax.f32 %v3725_v11, %v4796_v19  ;;  %v4798_v11 = vld [vmem:[#allocation16_spill] sm:$0xff] }
 0x1cd   : > { %v2664_v54 = vpop.eup %2663  ;;  %v3887_v37 = vadd.f32 %v2175_v10, %v2090_v43  ;;  %2685 = vrcp.f32 %v1741_v17  ;;  %v1955_v22 = vmul.f32 %v2662_v46, %v4769_v63  ;;  %v1368_v9 = vsub.f32 %v3706_v21, %v3719_v3  ;;  %v4808_v43 = vld [vmem:[#allocation65_spill] sm:$0xff] }
 0x1ce   : > { %v2666_v39 = vpop.eup %2665  ;;  %v2242_v52 = vmul.f32 %v2664_v54, %v2112_v31  ;;  %2687 = vpow2.f32 %v1490_v1  ;;  %v1554_v42 = vmul.f32 1.442695, %v1320_v27  ;;  %v1131_v15 = vmax.f32 %v1130_v28, %v4797_v40  ;;  %v4802_v31 = vld [vmem:[#allocation84_spill] sm:$0xff]  ;;  %v4807_v27 = vld [vmem:[#allocation95_spill] sm:$0xff]  ;;  %v4809_v10 = vld [vmem:[#allocation101_spill] sm:$0xff] }
 0x1cf   : > { %v2668_v33 = vpop.eup %2667  ;;  %v4801_v61 = vmax.f32 %v4799_v41, %v4800_v25  ;;  %2689 = vpow2.f32 %v1634_v59  ;;  %v1678_v12 = vadd.f32 %v2666_v39, %v2662_v46  ;;  %v1971_v4 = vmul.f32 %v2666_v39, %v4770_v48  ;;  %v4811_v54 = vld [vmem:[#allocation9_spill] sm:$0xff] }
 0x1d0   : > { %v2670_v21 = vpop.eup %2669  ;;  %2258 = vst [vmem:[%s3858_s6 + $0x8] sm:$0xff] %v2242_v52  ;;  %2691 = vpow2.f32 %v1522_v50  ;;  %v1586_v3 = vmul.f32 1.442695, %v1336_v24  ;;  %v1132_v55 = vmax.f32 %v1131_v15, %v4802_v31  ;;  %v4803_v45 = vmax.f32 %v3661_v5, %v4761_v56  ;;  %v4813_v52 = vld [vmem:[#allocation24_spill] sm:$0xff] }
 0x1d1   : > { %v3899_v60 = vmax.f32 %v4801_v61, %v4798_v11  ;;  %v1679_v51 = vadd.f32 %v2668_v33, %v1678_v12  ;;  %v1987_v59 = vmul.f32 %v2668_v33, %v4804_v26  ;;  %v2113_v13 = vadd.f32 %v1971_v4, %v1955_v22  ;;  %v4814_v33 = vld [vmem:[#allocation113_spill] sm:$0xff] }
 0x1d2   : > { %v3908_v6 = vmax.f32 %v4803_v45, %v3892_v16  ;;  %v1618_v14 = vmul.f32 1.442695, %v1352_v30  ;;  %v2672_v49 = vpop.eup %2671  ;;  %2693 = vpow2.f32 %v1554_v42  ;;  %v1650_v8 = vmul.f32 1.442695, %v1368_v9  ;;  %v4812_v9 = vld [vmem:[#allocation38_spill] sm:$0xff] }
 0x1d3   : > { %v3914_v18 = vmax.f32 %v1132_v55, %v4805_v44  ;;  %v2674_v1 = vpop.eup %2673  ;;  %v1680_v5 = vadd.f32 %v2670_v21, %v1679_v51  ;;  %v2003_v46 = vmul.f32 %v2670_v21, %v4773_v47  ;;  %v2114_v17 = vadd.f32 %v2113_v13, %v1987_v59  ;;  %v4815_v21 = vld [vmem:[#allocation69_spill] sm:$0xff]  ;;  %v4816_v55 = vld [vmem:[#allocation54_spill] sm:$0xff] }
 0x1d4   : > { %v4810_v50 = vmax.f32 %v4808_v43, %v4809_v10  ;;  %v2676_v30 = vpop.eup %2675  ;;  %2695 = vpow2.f32 %v1586_v3  ;;  %v2019_v41 = vmul.f32 %v2672_v49, %v4814_v33  ;;  %v2035_v4 = vmul.f32 %v2674_v1, %v4775_v62 }
 0x1d5   : > { %v1233_v22 = vsub.f32 %v4811_v54, %v3914_v18  ;;  %v1249_v39 = vsub.f32 %v4812_v9, %v3914_v18  ;;  %v1681_v15 = vadd.f32 %v2672_v49, %v1680_v5  ;;  %v2115_v61 = vadd.f32 %v2114_v17, %v2003_v46  ;;  %v4817_v5 = vld [vmem:[#allocation99_spill] sm:$0xff]  ;;  %v4818_v17 = vld [vmem:[#allocation94_spill] sm:$0xff] }
 0x1d6   : > { %v3923_v28 = vmax.f32 %v4810_v50, %v3910_v29  ;;  %2697 = vpow2.f32 %v1618_v14  ;;  %v2678_v12 = vpop.eup %2677  ;;  %v1265_v3 = vsub.f32 %v4815_v21, %v3914_v18  ;;  %v2051_v13 = vmul.f32 %v2676_v30, %v4776_v0 }
 0x1d7   : > { %2699 = vpow2.f32 %v1650_v8  ;;  %v2680_v51 = vpop.eup %2679  ;;  %v1682_v59 = vadd.f32 %v2674_v1, %v1681_v15  ;;  %v2116_v43 = vadd.f32 %v2115_v61, %v2019_v41  ;;  %v1281_v49 = vsub.f32 %v4817_v5, %v3914_v18 }
 0x1d8   : > { %v2682_v46 = vpop.eup %2681  ;;  %v1963_v14 = vmul.f32 %v2680_v51, %v4769_v63  ;;  %v1297_v8 = vsub.f32 %v4818_v17, %v3914_v18  ;;  %v1380_v50 = vmul.f32 1.442695, %v1233_v22  ;;  %v1412_v54 = vmul.f32 1.442695, %v1249_v39 }
 0x1d9   : > { %v2684_v9 = vpop.eup %2683  ;;  %v1683_v21 = vadd.f32 %v2676_v30, %v1682_v59  ;;  %v1742_v42 = vadd.f32 %v2682_v46, %v2680_v51  ;;  %v1979_v45 = vmul.f32 %v2682_v46, %v4770_v48  ;;  %v1313_v1 = vsub.f32 %v4796_v19, %v3914_v18 }
 0x1da   : > { %v2686_v15 = vpop.eup %2685  ;;  %v2117_v41 = vadd.f32 %v2116_v43, %v2035_v4  ;;  %v1329_v61 = vsub.f32 %v4797_v40, %v3914_v18  ;;  %2701 = vpow2.f32 %v1380_v50  ;;  %v1444_v5 = vmul.f32 1.442695, %v1265_v3 }
 0x1db   : > { %v2688_v24 = vpop.eup %2687  ;;  %v2250_v22 = vmul.f32 %v2686_v15, %v3887_v37  ;;  %v1684_v39 = vadd.f32 %v2678_v12, %v1683_v21  ;;  %v1743_v17 = vadd.f32 %v2684_v9, %v1742_v42  ;;  %v1345_v30 = vsub.f32 %v4802_v31, %v3914_v18 }
 0x1dc   : > { %v2690_v51 = vpop.eup %2689  ;;  %v1995_v59 = vmul.f32 %v2684_v9, %v4804_v26  ;;  %v2177_v19 = vadd.f32 %v1979_v45, %v1963_v14  ;;  %2703 = vpow2.f32 %v1412_v54  ;;  %v1476_v46 = vmul.f32 1.442695, %v1281_v49 }
 0x1dd   : > { %v2692_v4 = vpop.eup %2691  ;;  %2266 = vst [vmem:[%s3858_s6 + $0x48] sm:$0xff] %v2250_v22  ;;  %v1685_v43 = vadd.f32 %v2690_v51, %v1684_v39  ;;  %v1744_v40 = vadd.f32 %v2688_v24, %v1743_v17  ;;  %v1361_v3 = vsub.f32 %v4805_v44, %v3914_v18  ;;  %v1508_v50 = vmul.f32 1.442695, %v1297_v8  ;;  %v3958_v22 = vpop.f32.mrf.mxu1 }
 0x1de   : > { %v2118_v37 = vadd.f32 %v2117_v41, %v2051_v13  ;;  %v2011_v42 = vmul.f32 %v2688_v24, %v4773_v47  ;;  %v2178_v21 = vadd.f32 %v2177_v19, %v1995_v59  ;;  %2705 = vpow2.f32 %v1444_v5  ;;  %v4819_v24 = vld [vmem:[#allocation83_spill] sm:$0xff] }
 0x1df   : > { %v2694_v31 = vpop.eup %2693  ;;  %v2067_v15 = vmul.f32 %v2678_v12, %v4781_v7  ;;  %2707 = vrcp.f32 %v1685_v43  ;;  %v1745_v45 = vadd.f32 %v2692_v4, %v1744_v40  ;;  %v1540_v14 = vmul.f32 1.442695, %v1313_v1  ;;  %v4822_v40 = vld [vmem:[#allocation10_spill] sm:$0xff] }
 0x1e0   : > { %v2027_v49 = vmul.f32 %v2692_v4, %v4814_v33  ;;  %v2179_v54 = vadd.f32 %v2178_v21, %v2011_v42  ;;  %2709 = vpow2.f32 %v1476_v46  ;;  %v1572_v9 = vmul.f32 1.442695, %v1329_v61  ;;  %v4820_v61 = vld [vmem:[#allocation119_spill] sm:$0xff] }
 0x1e1   : > { %v2696_v44 = vpop.eup %2695  ;;  %v1746_v18 = vadd.f32 %v2694_v31, %v1745_v45  ;;  %2711 = vpow2.f32 %v1508_v50  ;;  %v1604_v13 = vmul.f32 1.442695, %v1345_v30  ;;  %v1273_v8 = vsub.f32 %v4819_v24, %v3908_v6 }
 0x1e2   : > { %v2119_v5 = vadd.f32 %v2118_v37, %v2067_v15  ;;  %v2043_v12 = vmul.f32 %v2694_v31, %v4775_v62  ;;  %v2180_v39 = vadd.f32 %v2179_v54, %v2027_v49  ;;  %v1636_v1 = vmul.f32 1.442695, %v1361_v3  ;;  %v4825_v49 = vld [vmem:[#allocation39_spill] sm:$0xff] }
 0x1e3   : > { %v2698_v41 = vpop.eup %2697  ;;  %v1747_v59 = vadd.f32 %v2696_v44, %v1746_v18  ;;  %2713 = vpow2.f32 %v1540_v14  ;;  %v1289_v19 = vsub.f32 %v4820_v61, %v3908_v6  ;;  %v4821_v46 = vmax.f32 %v4807_v27, %v4806_v38 }
 0x1e4   : > { %v2700_v17 = vpop.eup %2699  ;;  %v2083_v4 = vmul.f32 %v2690_v51, %v4783_v23  ;;  %v2181_v43 = vadd.f32 %v2180_v39, %v2043_v12  ;;  %2715 = vpow2.f32 %v1572_v9  ;;  %v1305_v50 = vsub.f32 %v4822_v40, %v3908_v6 }
 0x1e5   : > { %v3969_v30 = vmax.f32 %v4821_v46, %v3958_v22  ;;  %v1748_v3 = vadd.f32 %v2698_v41, %v1747_v59  ;;  %2717 = vpow2.f32 %v1604_v13  ;;  %v4823_v37 = vsub.f32 %v4813_v52, %v3908_v6  ;;  %v4826_v13 = vld [vmem:[#allocation70_spill] sm:$0xff]  ;;  %v4828_v46 = vld [vmem:[#allocation57_spill] sm:$0xff] }
 0x1e6   : > { %v4824_v21 = vsub.f32 %v4816_v55, %v3908_v6  ;;  %v2120_v27 = vadd.f32 %v2119_v5, %v2083_v4  ;;  %v2059_v15 = vmul.f32 %v2696_v44, %v4776_v0  ;;  %2719 = vpow2.f32 %v1636_v1 }
 0x1e7   : > { %v1396_v42 = vmul.f32 1.442695, %v4823_v37  ;;  %v1460_v51 = vmul.f32 1.442695, %v1273_v8  ;;  %v2702_v45 = vpop.eup %2701  ;;  %v1749_v14 = vadd.f32 %v2700_v17, %v1748_v3  ;;  %v1321_v54 = vsub.f32 %v4825_v49, %v3908_v6  ;;  %v4827_v8 = vld [vmem:[#allocation27_spill] sm:$0xff] }
 0x1e8   : > { %v1428_v31 = vmul.f32 1.442695, %v4824_v21  ;;  %v1492_v9 = vmul.f32 1.442695, %v1289_v19  ;;  %v2075_v18 = vmul.f32 %v2698_v41, %v4781_v7  ;;  %v1956_v52 = vmul.f32 %v2702_v45, %v3530_v34  ;;  %v4831_v49 = vld [vmem:[#allocation131_spill] sm:$0xff] }
 0x1e9   : > { %2721 = vpow2.f32 %v1396_v42  ;;  %v1337_v55 = vsub.f32 %v4826_v13, %v3908_v6  ;;  %v2704_v24 = vpop.eup %2703  ;;  %v2182_v5 = vadd.f32 %v2181_v43, %v2059_v15  ;;  %v1524_v44 = vmul.f32 1.442695, %v1305_v50  ;;  %v4832_v13 = vld [vmem:[#allocation122_spill] sm:$0xff] }
 0x1ea   : > { %2723 = vpow2.f32 %v1428_v31  ;;  %v1138_v12 = vmax.f32 %v3923_v28, %v4827_v8  ;;  %v1686_v39 = vadd.f32 %v2704_v24, %v2702_v45  ;;  %v1972_v1 = vmul.f32 %v2704_v24, %v3532_v2 }
 0x1eb   : > { %2725 = vrcp.f32 %v1749_v14  ;;  %v1353_v59 = vsub.f32 %v4761_v56, %v3908_v6  ;;  %v2706_v41 = vpop.eup %2705  ;;  %v1369_v61 = vsub.f32 %v3892_v16, %v3908_v6  ;;  %v1556_v19 = vmul.f32 1.442695, %v1321_v54  ;;  %v4829_v56 = vld [vmem:[#allocation86_spill] sm:$0xff]  ;;  %v4830_v14 = vld [vmem:[#allocation132_spill] sm:$0xff] }
 0x1ec   : > { %2727 = vpow2.f32 %v1460_v51  ;;  %v1139_v4 = vmax.f32 %v1138_v12, %v4828_v46  ;;  %v2708_v43 = vpop.eup %2707  ;;  %v1687_v40 = vadd.f32 %v2706_v41, %v1686_v39  ;;  %v1988_v28 = vmul.f32 %v2706_v41, %v3534_v36  ;;  %v4833_v12 = vld [vmem:[#allocation11_spill] sm:$0xff] }
 0x1ed   : > { %2729 = vpow2.f32 %v1492_v9  ;;  %v2121_v50 = vadd.f32 %v1972_v1, %v1956_v52  ;;  %v1588_v3 = vmul.f32 1.442695, %v1337_v55  ;;  %v2710_v37 = vpop.eup %2709  ;;  %v2243_v42 = vmul.f32 %v2708_v43, %v2120_v27  ;;  %v4834_v1 = vld [vmem:[#allocation40_spill] sm:$0xff] }
 0x1ee   : > { %v2183_v21 = vadd.f32 %v2182_v5, %v2075_v18  ;;  %2731 = vpow2.f32 %v1524_v44  ;;  %v1140_v31 = vmax.f32 %v1139_v4, %v4829_v56  ;;  %v2712_v15 = vpop.eup %2711  ;;  %v1688_v51 = vadd.f32 %v2710_v37, %v1687_v40 }
 0x1ef   : > { %v2004_v16 = vmul.f32 %v2710_v37, %v3536_v35  ;;  %v2122_v6 = vadd.f32 %v2121_v50, %v1988_v28  ;;  %v1620_v45 = vmul.f32 1.442695, %v1353_v59  ;;  %2259 = vst [vmem:[%s3858_s6 + $0x10] sm:$0xff] %v2243_v42  ;;  %v2091_v9 = vmul.f32 %v2700_v17, %v4783_v23  ;;  %v4835_v17 = vld [vmem:[#allocation26_spill] sm:$0xff]  ;;  %v4836_v50 = vld [vmem:[#allocation71_spill] sm:$0xff]  ;;  %v4837_v37 = vld [vmem:[#allocation56_spill] sm:$0xff] }
 0x1f0   : > { %v1652_v52 = vmul.f32 1.442695, %v1369_v61  ;;  %v4003_v55 = vmax.f32 %v1140_v31, %v4832_v13  ;;  %v2714_v27 = vpop.eup %2713  ;;  %v1689_v18 = vadd.f32 %v2712_v15, %v1688_v51  ;;  %v2020_v24 = vmul.f32 %v2712_v15, %v3549_v57 }
 0x1f1   : > { %v2123_v5 = vadd.f32 %v2122_v6, %v2004_v16  ;;  %2733 = vpow2.f32 %v1556_v19  ;;  %v2716_v44 = vpop.eup %2715  ;;  %v1242_v41 = vsub.f32 %v4835_v17, %v3969_v30  ;;  %v2184_v4 = vadd.f32 %v2183_v21, %v2091_v9 }
 0x1f2   : > { %2735 = vpow2.f32 %v1588_v3  ;;  %v1234_v39 = vsub.f32 %v4833_v12, %v4003_v55  ;;  %v1250_v59 = vsub.f32 %v4834_v1, %v4003_v55  ;;  %v2718_v61 = vpop.eup %2717  ;;  %v1690_v43 = vadd.f32 %v2714_v27, %v1689_v18 }
 0x1f3   : > { %v2124_v40 = vadd.f32 %v2123_v5, %v2020_v24  ;;  %2737 = vpow2.f32 %v1620_v45  ;;  %v4012_v28 = vpop.eup %2719  ;;  %v2036_v19 = vmul.f32 %v2714_v27, %v3551_v53  ;;  %v1266_v3 = vsub.f32 %v4836_v50, %v4003_v55 }
 0x1f4   : > { %2739 = vpow2.f32 %v1652_v52  ;;  %v1258_v42 = vsub.f32 %v4837_v37, %v3969_v30  ;;  %v1691_v15 = vadd.f32 %v2716_v44, %v1690_v43  ;;  %v2052_v51 = vmul.f32 %v2716_v44, %v3553_v20 }
 0x1f5   : > { %v1282_v21 = vsub.f32 %v4809_v10, %v4003_v55  ;;  %v1298_v16 = vsub.f32 %v3910_v29, %v4003_v55  ;;  %v1314_v9 = vsub.f32 %v4827_v8, %v4003_v55  ;;  %v1382_v52 = vmul.f32 1.442695, %v1234_v39 }
 0x1f6   : > { %v2722_v31 = vpop.eup %2721  ;;  %v1414_v27 = vmul.f32 1.442695, %v1250_v59  ;;  %v1692_v24 = vadd.f32 %v2718_v61, %v1691_v15  ;;  %v2125_v5 = vadd.f32 %v2124_v40, %v2036_v19  ;;  %v1330_v29 = vsub.f32 %v4828_v46, %v4003_v55 }
 0x1f7   : > { %v2724_v6 = vpop.eup %2723  ;;  %v1964_v45 = vmul.f32 %v2722_v31, %v3530_v34  ;;  %2741 = vpow2.f32 %v1382_v52  ;;  %v1446_v43 = vmul.f32 1.442695, %v1266_v3  ;;  %v1346_v39 = vsub.f32 %v4829_v56, %v4003_v55  ;;  %v4838_v3 = vld [vmem:[#allocation85_spill] sm:$0xff] }
 0x1f8   : > { %v2726_v18 = vpop.eup %2725  ;;  %v1750_v12 = vadd.f32 %v2724_v6, %v2722_v31  ;;  %v1980_v44 = vmul.f32 %v2724_v6, %v3532_v2  ;;  %v1693_v54 = vadd.f32 %v4012_v28, %v1692_v24  ;;  %v1478_v59 = vmul.f32 1.442695, %v1282_v21 }
 0x1f9   : > { %v2728_v1 = vpop.eup %2727  ;;  %v2251_v10 = vmul.f32 %v2726_v18, %v2184_v4  ;;  %2743 = vpow2.f32 %v1414_v27  ;;  %v1510_v31 = vmul.f32 1.442695, %v1298_v16  ;;  %v2126_v15 = vadd.f32 %v2125_v5, %v2052_v51  ;;  %v4839_v5 = vld [vmem:[#allocation45_spill] sm:$0xff] }
 0x1fa   : > { %v2730_v50 = vpop.eup %2729  ;;  %v1751_v8 = vadd.f32 %v2728_v1, %v1750_v12  ;;  %v1996_v40 = vmul.f32 %v2728_v1, %v3534_v36  ;;  %v2185_v19 = vadd.f32 %v1980_v44, %v1964_v45  ;;  %2745 = vrcp.f32 %v1693_v54 }
 0x1fb   : > { %2267 = vst [vmem:[%s3858_s6 + $0x50] sm:$0xff] %v2251_v10  ;;  %v2732_v4 = vpop.eup %2731  ;;  %v1274_v6 = vsub.f32 %v4838_v3, %v3969_v30  ;;  %v2012_v52 = vmul.f32 %v2730_v50, %v3536_v35  ;;  %2747 = vpow2.f32 %v1446_v43  ;;  %v1542_v24 = vmul.f32 1.442695, %v1314_v9  ;;  %v4840_v10 = vld [vmem:[#allocation121_spill] sm:$0xff]  ;;  %v4841_v9 = vld [vmem:[#allocation12_spill] sm:$0xff] }
 0x1fc   : > { %v1752_v46 = vadd.f32 %v2730_v50, %v1751_v8  ;;  %v2186_v18 = vadd.f32 %v2185_v19, %v1996_v40  ;;  %v2068_v56 = vmul.f32 %v2718_v61, %v4789_v58  ;;  %2749 = vpow2.f32 %v1478_v59 }
 0x1fd   : > { %v1574_v12 = vmul.f32 1.442695, %v1330_v29  ;;  %v2028_v16 = vmul.f32 %v2732_v4, %v3549_v57  ;;  %2751 = vpow2.f32 %v1510_v31  ;;  %v1606_v54 = vmul.f32 1.442695, %v1346_v39 }
 0x1fe   : > { %v1753_v21 = vadd.f32 %v2732_v4, %v1752_v46  ;;  %v2734_v45 = vpop.eup %2733  ;;  %v2187_v27 = vadd.f32 %v2186_v18, %v2012_v52  ;;  %v1218_v44 = vmax.f32 %v3899_v60, %v4839_v5  ;;  %v1290_v43 = vsub.f32 %v4840_v10, %v3969_v30  ;;  %v4842_v46 = vld [vmem:[#allocation41_spill] sm:$0xff]  ;;  %v4061_v52 = vpop.f32.mrf.mxu0  ;;  %v4865_v60 = vld [vmem:[#allocation58_spill] sm:$0xff] }
 0x1ff   : > { %v2736_v51 = vpop.eup %2735  ;;  %v1306_v61 = vsub.f32 %v4841_v9, %v3969_v30  ;;  %v2127_v8 = vadd.f32 %v2126_v15, %v2068_v56  ;;  %v1362_v59 = vsub.f32 %v4832_v13, %v4003_v55  ;;  %2753 = vpow2.f32 %v1542_v24 }
 0x200   : > { %v1754_v1 = vadd.f32 %v2734_v45, %v1753_v21  ;;  %v2738_v50 = vpop.eup %2737  ;;  %v2188_v29 = vadd.f32 %v2187_v27, %v2028_v16  ;;  %v2084_v39 = vmul.f32 %v4012_v28, %v4790_v32  ;;  %2755 = vpow2.f32 %v1574_v12  ;;  %v4845_v16 = vld [vmem:[#allocation103_spill] sm:$0xff] }
 0x201   : > { %v4048_v40 = vpop.eup %2739  ;;  %v1398_v31 = vmul.f32 1.442695, %v1242_v41  ;;  %v2044_v4 = vmul.f32 %v2734_v45, %v3551_v53  ;;  %2757 = vpow2.f32 %v1606_v54  ;;  %v1430_v15 = vmul.f32 1.442695, %v1258_v42  ;;  %v4844_v45 = vld [vmem:[#allocation127_spill] sm:$0xff] }
 0x202   : > { %v1755_v19 = vadd.f32 %v2736_v51, %v1754_v1  ;;  %v1462_v13 = vmul.f32 1.442695, %v1274_v6  ;;  %v1322_v3 = vsub.f32 %v4842_v46, %v3969_v30  ;;  %v1494_v28 = vmul.f32 1.442695, %v1290_v43  ;;  %v4843_v6 = vld [vmem:[#allocation72_spill] sm:$0xff] }
 0x203   : > { %2759 = vpow2.f32 %v1398_v31  ;;  %v2128_v18 = vadd.f32 %v2127_v8, %v2084_v39  ;;  %v2189_v24 = vadd.f32 %v2188_v29, %v2044_v4  ;;  %v1638_v17 = vmul.f32 1.442695, %v1362_v59  ;;  %v4848_v4 = vld [vmem:[#allocation74_spill] sm:$0xff] }
 0x204   : > { %v1756_v55 = vadd.f32 %v2738_v50, %v1755_v19  ;;  %2761 = vpow2.f32 %v1430_v15  ;;  %v2742_v41 = vpop.eup %2741  ;;  %v2060_v21 = vmul.f32 %v2736_v51, %v3553_v20  ;;  %v1526_v37 = vmul.f32 1.442695, %v1306_v61  ;;  %v4847_v19 = vld [vmem:[#allocation29_spill] sm:$0xff] }
 0x205   : > { %2763 = vpow2.f32 %v1462_v13  ;;  %v1957_v42 = vmul.f32 %v2742_v41, %v4769_v63  ;;  %v1338_v12 = vsub.f32 %v4843_v6, %v3969_v30  ;;  %v4846_v27 = vmax.f32 %v4844_v45, %v4845_v16  ;;  %v4849_v15 = vld [vmem:[#allocation93_spill] sm:$0xff]  ;;  %v4850_v13 = vld [vmem:[#allocation43_spill] sm:$0xff] }
 0x206   : > { %v1757_v56 = vadd.f32 %v4048_v40, %v1756_v55  ;;  %2765 = vpow2.f32 %v1494_v28  ;;  %v2744_v1 = vpop.eup %2743  ;;  %v1354_v10 = vsub.f32 %v4806_v38, %v3969_v30  ;;  %v1370_v51 = vsub.f32 %v3958_v22, %v3969_v30 }
 0x207   : > { %v1145_v54 = vmax.f32 %v4846_v27, %v4061_v52  ;;  %v1558_v43 = vmul.f32 1.442695, %v1322_v3  ;;  %v2746_v9 = vpop.eup %2745  ;;  %v2190_v61 = vadd.f32 %v2189_v24, %v2060_v21  ;;  %v1694_v8 = vadd.f32 %v2744_v1, %v2742_v41  ;;  %v4854_v21 = vld [vmem:[#allocation59_spill] sm:$0xff] }
 0x208   : > { %2767 = vrcp.f32 %v1757_v56  ;;  %v1973_v29 = vmul.f32 %v2744_v1, %v4770_v48  ;;  %v2748_v59 = vpop.eup %2747  ;;  %v2244_v39 = vmul.f32 %v2746_v9, %v2128_v18  ;;  %v4851_v38 = vmax.f32 %v4849_v15, %v4850_v13 }
 0x209   : > { %2769 = vpow2.f32 %v1638_v17  ;;  %v1146_v31 = vmax.f32 %v1145_v54, %v4847_v19  ;;  %v2750_v46 = vpop.eup %2749  ;;  %v1695_v22 = vadd.f32 %v2748_v59, %v1694_v8  ;;  %v1989_v30 = vmul.f32 %v2748_v59, %v4804_v26  ;;  %v4852_v17 = vld [vmem:[#allocation18_spill] sm:$0xff]  ;;  %v4855_v8 = vld [vmem:[#allocation88_spill] sm:$0xff] }
 0x20a   : > { %2771 = vpow2.f32 %v1526_v37  ;;  %v1211_v55 = vmax.f32 %v4851_v38, %v4848_v4  ;;  %v2129_v3 = vadd.f32 %v1973_v29, %v1957_v42  ;;  %v1590_v28 = vmul.f32 1.442695, %v1338_v12  ;;  %v2752_v24 = vpop.eup %2751  ;;  %2260 = vst [vmem:[%s3858_s6 + $0x18] sm:$0xff] %v2244_v39  ;;  %v4093_v42 = vpop.f32.mrf.mxu1  ;;  %v4856_v29 = vld [vmem:[#allocation104_spill] sm:$0xff] }
 0x20b   : > { %v4853_v41 = vmax.f32 %v4831_v49, %v4830_v14  ;;  %v2076_v56 = vmul.f32 %v2738_v50, %v4789_v58  ;;  %2773 = vpow2.f32 %v1558_v43  ;;  %v1147_v37 = vmax.f32 %v1146_v31, %v4854_v21  ;;  %v4097_v39 = vpop.f32.mrf.mxu0 }
 0x20c   : > { %v1696_v6 = vadd.f32 %v2750_v46, %v1695_v22  ;;  %v2005_v45 = vmul.f32 %v2750_v46, %v4773_v47  ;;  %v2130_v27 = vadd.f32 %v2129_v3, %v1989_v30  ;;  %v1622_v54 = vmul.f32 1.442695, %v1354_v10  ;;  %v2754_v12 = vpop.eup %2753  ;;  %v4857_v10 = vld [vmem:[#allocation47_spill] sm:$0xff] }
 0x20d   : > { %v4087_v18 = vmax.f32 %v4853_v41, %v4852_v17  ;;  %v2191_v1 = vadd.f32 %v2190_v61, %v2076_v56  ;;  %v1654_v9 = vmul.f32 1.442695, %v1370_v51  ;;  %v1148_v49 = vmax.f32 %v1147_v37, %v4855_v8  ;;  %v2756_v50 = vpop.eup %2755  ;;  %v4858_v61 = vld [vmem:[#allocation126_spill] sm:$0xff] }
 0x20e   : > { %v1212_v59 = vmax.f32 %v1211_v55, %v4856_v29  ;;  %v1697_v43 = vadd.f32 %v2752_v24, %v1696_v6  ;;  %v2021_v31 = vmul.f32 %v2752_v24, %v4814_v33  ;;  %v2131_v15 = vadd.f32 %v2130_v27, %v2005_v45  ;;  %v4100_v38 = vpop.eup %2757  ;;  %v4860_v24 = vld [vmem:[#allocation105_spill] sm:$0xff]  ;;  %v4862_v27 = vld [vmem:[#allocation76_spill] sm:$0xff] }
 0x20f   : > { %2775 = vpow2.f32 %v1590_v28  ;;  %v2092_v51 = vmul.f32 %v4048_v40, %v4790_v32  ;;  %v4107_v22 = vmax.f32 %v1148_v49, %v4858_v61  ;;  %v4859_v28 = vld [vmem:[#allocation128_spill] sm:$0xff]  ;;  %v4123_v49 = vmax.f32 %v1218_v44, %v4862_v27 }
 0x210   : > { %v4110_v55 = vmax.f32 %v1212_v59, %v4093_v42  ;;  %v2760_v30 = vpop.eup %2759  ;;  %v1698_v3 = vadd.f32 %v2754_v12, %v1697_v43  ;;  %v2132_v41 = vadd.f32 %v2131_v15, %v2021_v31  ;;  %2777 = vpow2.f32 %v1622_v54 }
 0x211   : > { %v4861_v56 = vmax.f32 %v4859_v28, %v4860_v24  ;;  %v2762_v6 = vpop.eup %2761  ;;  %v2192_v45 = vadd.f32 %v2191_v1, %v2092_v51  ;;  %2779 = vpow2.f32 %v1654_v9  ;;  %v1965_v40 = vmul.f32 %v2760_v30, %v4769_v63  ;;  %v4863_v1 = vld [vmem:[#allocation13_spill] sm:$0xff]  ;;  %v4864_v51 = vld [vmem:[#allocation28_spill] sm:$0xff] }
 0x212   : > { %v2764_v59 = vpop.eup %2763  ;;  %v1699_v43 = vadd.f32 %v2756_v50, %v1698_v3  ;;  %v2037_v54 = vmul.f32 %v2754_v12, %v4775_v62  ;;  %v1758_v31 = vadd.f32 %v2762_v6, %v2760_v30  ;;  %v1981_v15 = vmul.f32 %v2762_v6, %v4770_v48  ;;  %v4866_v6 = vld [vmem:[#allocation42_spill] sm:$0xff]  ;;  %v4867_v63 = vld [vmem:[#allocation73_spill] sm:$0xff] }
 0x213   : > { %v4116_v37 = vmax.f32 %v4861_v56, %v4097_v39  ;;  %v2766_v28 = vpop.eup %2765  ;;  %v2053_v56 = vmul.f32 %v2756_v50, %v4776_v0  ;;  %v1235_v9 = vsub.f32 %v4863_v1, %v4107_v22  ;;  %v1243_v46 = vsub.f32 %v4864_v51, %v4110_v55 }
 0x214   : > { %v1700_v3 = vadd.f32 %v4100_v38, %v1699_v43  ;;  %v2133_v12 = vadd.f32 %v2132_v41, %v2037_v54  ;;  %v1759_v30 = vadd.f32 %v2764_v59, %v1758_v31  ;;  %v1251_v14 = vsub.f32 %v4866_v6, %v4107_v22 }
 0x215   : > { %v2768_v17 = vpop.eup %2767  ;;  %v1997_v27 = vmul.f32 %v2764_v59, %v4804_v26  ;;  %v2193_v1 = vadd.f32 %v1981_v15, %v1965_v40  ;;  %v1267_v51 = vsub.f32 %v4867_v63, %v4107_v22  ;;  %v1283_v58 = vsub.f32 %v4845_v16, %v4107_v22 }
 0x216   : > { %v2770_v48 = vpop.eup %2769  ;;  %v2252_v50 = vmul.f32 %v2768_v17, %v2192_v45  ;;  %v1760_v44 = vadd.f32 %v2766_v28, %v1759_v30  ;;  %v1299_v41 = vsub.f32 %v4061_v52, %v4107_v22  ;;  %v2013_v43 = vmul.f32 %v2766_v28, %v4773_v47 }
 0x217   : > { %v2772_v5 = vpop.eup %2771  ;;  %v1701_v32 = vadd.f32 %v2770_v48, %v1700_v3  ;;  %v2194_v54 = vadd.f32 %v2193_v1, %v1997_v27  ;;  %v1315_v17 = vsub.f32 %v4847_v19, %v4107_v22  ;;  %v1384_v45 = vmul.f32 1.442695, %v1235_v9 }
 0x218   : > { %2268 = vst [vmem:[%s3858_s6 + $0x58] sm:$0xff] %v2252_v50  ;;  %v2774_v40 = vpop.eup %2773  ;;  %v2134_v59 = vadd.f32 %v2133_v12, %v2053_v56  ;;  %v1761_v63 = vadd.f32 %v2772_v5, %v1760_v44  ;;  %v1331_v31 = vsub.f32 %v4854_v21, %v4107_v22  ;;  %v2029_v16 = vmul.f32 %v2772_v5, %v4814_v33 }
 0x219   : > { %2781 = vrcp.f32 %v1701_v32  ;;  %v2195_v15 = vadd.f32 %v2194_v54, %v2013_v43  ;;  %v1416_v52 = vmul.f32 1.442695, %v1251_v14  ;;  %v1347_v27 = vsub.f32 %v4855_v8, %v4107_v22  ;;  %v4868_v8 = vld [vmem:[#allocation87_spill] sm:$0xff]  ;;  %v4869_v43 = vld [vmem:[#allocation125_spill] sm:$0xff] }
 0x21a   : > { %2783 = vpow2.f32 %v1384_v45  ;;  %v1762_v3 = vadd.f32 %v2774_v40, %v1761_v63  ;;  %v1448_v28 = vmul.f32 1.442695, %v1267_v51  ;;  %v1480_v30 = vmul.f32 1.442695, %v1283_v58 }
 0x21b   : > { %v2045_v9 = vmul.f32 %v2774_v40, %v4775_v62  ;;  %v2196_v56 = vadd.f32 %v2195_v15, %v2029_v16  ;;  %2785 = vpow2.f32 %v1416_v52  ;;  %v1512_v32 = vmul.f32 1.442695, %v1299_v41  ;;  %v4870_v41 = vld [vmem:[#allocation14_spill] sm:$0xff] }
 0x21c   : > { %v2776_v19 = vpop.eup %2775  ;;  %v2069_v21 = vmul.f32 %v4100_v38, %v4781_v7  ;;  %2787 = vpow2.f32 %v1448_v28  ;;  %v1544_v5 = vmul.f32 1.442695, %v1315_v17  ;;  %v1576_v6 = vmul.f32 1.442695, %v1331_v31 }
 0x21d   : > { %v1763_v44 = vadd.f32 %v2776_v19, %v1762_v3  ;;  %v2778_v12 = vpop.eup %2777  ;;  %v2197_v14 = vadd.f32 %v2196_v56, %v2045_v9  ;;  %2789 = vpow2.f32 %v1480_v30  ;;  %v1275_v50 = vsub.f32 %v4868_v8, %v4110_v55  ;;  %v4179_v9 = vpop.f32.mrf.mxu0 }
 0x21e   : > { %v2780_v58 = vpop.eup %2779  ;;  %v2135_v1 = vadd.f32 %v2134_v59, %v2069_v21  ;;  %v1291_v54 = vsub.f32 %v4869_v43, %v4110_v55  ;;  %v1307_v45 = vsub.f32 %v4870_v41, %v4110_v55  ;;  %v2061_v38 = vmul.f32 %v2776_v19, %v4776_v0 }
 0x21f   : > { %v1764_v51 = vadd.f32 %v2778_v12, %v1763_v44  ;;  %v1363_v17 = vsub.f32 %v4858_v61, %v4107_v22  ;;  %2791 = vpow2.f32 %v1512_v32  ;;  %v1608_v40 = vmul.f32 1.442695, %v1347_v27  ;;  %v4872_v27 = vld [vmem:[#allocation31_spill] sm:$0xff]  ;;  %v4873_v44 = vld [vmem:[#allocation61_spill] sm:$0xff] }
 0x220   : > { %v2085_v63 = vmul.f32 %v2770_v48, %v4783_v23  ;;  %2793 = vpow2.f32 %v1544_v5  ;;  %v1400_v16 = vmul.f32 1.442695, %v1243_v46  ;;  %v2198_v59 = vadd.f32 %v2197_v14, %v2061_v38 }
 0x221   : > { %v1765_v31 = vadd.f32 %v2780_v58, %v1764_v51  ;;  %2795 = vpow2.f32 %v1576_v6  ;;  %v1323_v15 = vsub.f32 %v4850_v13, %v4110_v55  ;;  %v4871_v52 = vsub.f32 %v4865_v60, %v4110_v55  ;;  %v4876_v51 = vld [vmem:[#allocation129_spill] sm:$0xff] }
 0x222   : > { %v2136_v28 = vadd.f32 %v2135_v1, %v2085_v63  ;;  %v2077_v30 = vmul.f32 %v2778_v12, %v4781_v7  ;;  %v1464_v61 = vmul.f32 1.442695, %v1275_v50  ;;  %v2093_v22 = vmul.f32 %v2780_v58, %v4783_v23  ;;  %v4875_v58 = vld [vmem:[#allocation90_spill] sm:$0xff]  ;;  %v4879_v63 = vld [vmem:[#allocation35_spill] sm:$0xff] }
 0x223   : > { %v1432_v3 = vmul.f32 1.442695, %v4871_v52  ;;  %2797 = vrcp.f32 %v1765_v31  ;;  %v1640_v48 = vmul.f32 1.442695, %v1363_v17  ;;  %v1154_v46 = vmax.f32 %v4116_v37, %v4872_v27  ;;  %v4184_v37 = vpop.f32.mrf.mxu1  ;;  %v4880_v52 = vld [vmem:[#allocation78_spill] sm:$0xff] }
 0x224   : > { %2799 = vpow2.f32 %v1608_v40  ;;  %v1339_v19 = vsub.f32 %v4848_v4, %v4110_v55  ;;  %v1355_v13 = vsub.f32 %v4856_v29, %v4110_v55  ;;  %v1496_v60 = vmul.f32 1.442695, %v1291_v54  ;;  %v4874_v29 = vld [vmem:[#allocation106_spill] sm:$0xff] }
 0x225   : > { %2801 = vpow2.f32 %v1400_v16  ;;  %v2199_v32 = vadd.f32 %v2198_v59, %v2077_v30  ;;  %v1371_v21 = vsub.f32 %v4093_v42, %v4110_v55  ;;  %v1155_v5 = vmax.f32 %v1154_v46, %v4873_v44  ;;  %v4877_v42 = vld [vmem:[#allocation107_spill] sm:$0xff]  ;;  %v4882_v46 = vld [vmem:[#allocation33_spill] sm:$0xff] }
 0x226   : > { %v2782_v56 = vpop.eup %2781  ;;  %2803 = vpow2.f32 %v1432_v3  ;;  %v1528_v14 = vmul.f32 1.442695, %v1307_v45  ;;  %v1220_v6 = vmax.f32 %v4123_v49, %v4874_v29  ;;  %v1560_v50 = vmul.f32 1.442695, %v1323_v15 }
 0x227   : > { %v2784_v12 = vpop.eup %2783  ;;  %v2245_v4 = vmul.f32 %v2782_v56, %v2136_v28  ;;  %2805 = vpow2.f32 %v1464_v61  ;;  %v1156_v1 = vmax.f32 %v1155_v5, %v4875_v58  ;;  %v4878_v55 = vmax.f32 %v4876_v51, %v4877_v42  ;;  %v4884_v56 = vld [vmem:[#allocation30_spill] sm:$0xff] }
 0x228   : > { %v1958_v8 = vmul.f32 %v2784_v12, %v3530_v34  ;;  %v2786_v54 = vpop.eup %2785  ;;  %2807 = vpow2.f32 %v1496_v60  ;;  %v1592_v41 = vmul.f32 1.442695, %v1339_v19  ;;  %v1624_v38 = vmul.f32 1.442695, %v1355_v13  ;;  %v4883_v60 = vld [vmem:[#allocation15_spill] sm:$0xff] }
 0x229   : > { %v4194_v43 = vmax.f32 %v4878_v55, %v4179_v9  ;;  %2261 = vst [vmem:[%s3858_s6 + $0x20] sm:$0xff] %v2245_v4  ;;  %v4198_v45 = vmax.f32 %v1220_v6, %v4184_v37  ;;  %v2788_v49 = vpop.eup %2787  ;;  %2809 = vpow2.f32 %v1640_v48  ;;  %v1702_v17 = vadd.f32 %v2786_v54, %v2784_v12  ;;  %v4886_v6 = vld [vmem:[#allocation44_spill] sm:$0xff]  ;;  %v4888_v55 = vld [vmem:[#allocation89_spill] sm:$0xff] }
 0x22a   : > { %v1974_v40 = vmul.f32 %v2786_v54, %v3532_v2  ;;  %v4202_v31 = vmax.f32 %v1156_v1, %v4879_v63  ;;  %v2790_v16 = vpop.eup %2789  ;;  %v2200_v59 = vadd.f32 %v2199_v32, %v2093_v22  ;;  %2811 = vpow2.f32 %v1528_v14 }
 0x22b   : > { %v1656_v15 = vmul.f32 1.442695, %v1371_v21  ;;  %v4881_v3 = vmax.f32 %v4087_v18, %v4857_v10  ;;  %v1703_v30 = vadd.f32 %v2788_v49, %v1702_v17  ;;  %v1990_v61 = vmul.f32 %v2788_v49, %v3534_v36  ;;  %v4885_v21 = vld [vmem:[#allocation60_spill] sm:$0xff] }
 0x22c   : > { %v2137_v48 = vadd.f32 %v1974_v40, %v1958_v8  ;;  %v2792_v13 = vpop.eup %2791  ;;  %2813 = vpow2.f32 %v1560_v50  ;;  %v1236_v22 = vsub.f32 %v4883_v60, %v4202_v31  ;;  %v1244_v32 = vsub.f32 %v4884_v56, %v4198_v45  ;;  %v4887_v50 = vld [vmem:[#allocation75_spill] sm:$0xff] }
 0x22d   : > { %v4208_v28 = vmax.f32 %v4881_v3, %v4880_v52  ;;  %v1260_v18 = vsub.f32 %v4885_v21, %v4198_v45  ;;  %v2794_v5 = vpop.eup %2793  ;;  %v1704_v12 = vadd.f32 %v2790_v16, %v1703_v30  ;;  %v2006_v4 = vmul.f32 %v2790_v16, %v3536_v35 }
 0x22e   : > { %v2138_v14 = vadd.f32 %v2137_v48, %v1990_v61  ;;  %v1252_v8 = vsub.f32 %v4886_v6, %v4202_v31  ;;  %v2796_v1 = vpop.eup %2795  ;;  %2815 = vpow2.f32 %v1592_v41  ;;  %v1268_v51 = vsub.f32 %v4887_v50, %v4202_v31 }
 0x22f   : > { %v1705_v40 = vadd.f32 %v2792_v13, %v1704_v12  ;;  %2817 = vpow2.f32 %v1624_v38  ;;  %v2022_v41 = vmul.f32 %v2792_v13, %v3549_v57  ;;  %v1284_v48 = vsub.f32 %v4860_v24, %v4202_v31 }
 0x230   : > { %v2798_v17 = vpop.eup %2797  ;;  %v2139_v3 = vadd.f32 %v2138_v14, %v2006_v4  ;;  %v1386_v60 = vmul.f32 1.442695, %v1236_v22  ;;  %2819 = vpow2.f32 %v1656_v15  ;;  %v1300_v19 = vsub.f32 %v4097_v39, %v4202_v31 }
 0x231   : > { %v2800_v30 = vpop.eup %2799  ;;  %v2253_v61 = vmul.f32 %v2798_v17, %v2200_v59  ;;  %v1706_v50 = vadd.f32 %v2794_v5, %v1705_v40  ;;  %v1418_v12 = vmul.f32 1.442695, %v1252_v8  ;;  %v1316_v59 = vsub.f32 %v4872_v27, %v4202_v31 }
 0x232   : > { %v2802_v6 = vpop.eup %2801  ;;  %2821 = vpow2.f32 %v1386_v60  ;;  %v1450_v13 = vmul.f32 1.442695, %v1268_v51  ;;  %v2140_v24 = vadd.f32 %v2139_v3, %v2022_v41  ;;  %v2038_v15 = vmul.f32 %v2794_v5, %v3551_v53 }
 0x233   : > { %v2804_v4 = vpop.eup %2803  ;;  %2269 = vst [vmem:[%s3858_s6 + $0x60] sm:$0xff] %v2253_v61  ;;  %v1966_v38 = vmul.f32 %v2802_v6, %v3530_v34  ;;  %v1707_v17 = vadd.f32 %v2796_v1, %v1706_v50  ;;  %v1332_v39 = vsub.f32 %v4873_v44, %v4202_v31  ;;  %2823 = vpow2.f32 %v1418_v12 }
 0x234   : > { %v2806_v14 = vpop.eup %2805  ;;  %v1766_v22 = vadd.f32 %v2804_v4, %v2802_v6  ;;  %v1982_v40 = vmul.f32 %v2804_v4, %v3532_v2  ;;  %v1482_v8 = vmul.f32 1.442695, %v1284_v48  ;;  %v1348_v27 = vsub.f32 %v4875_v58, %v4202_v31 }
 0x235   : > { %v2808_v61 = vpop.eup %2807  ;;  %v1708_v16 = vadd.f32 %v2800_v30, %v1707_v17  ;;  %v1364_v51 = vsub.f32 %v4879_v63, %v4202_v31  ;;  %v1998_v41 = vmul.f32 %v2806_v14, %v3534_v36  ;;  %2825 = vpow2.f32 %v1450_v13 }
 0x236   : > { %v1767_v49 = vadd.f32 %v2806_v14, %v1766_v22  ;;  %v2810_v3 = vpop.eup %2809  ;;  %v2201_v60 = vadd.f32 %v1982_v40, %v1966_v38  ;;  %v1514_v5 = vmul.f32 1.442695, %v1300_v19  ;;  %v2141_v44 = vadd.f32 %v2140_v24, %v2038_v15  ;;  %v4889_v14 = vld [vmem:[#allocation123_spill] sm:$0xff] }
 0x237   : > { %v2812_v6 = vpop.eup %2811  ;;  %v1709_v50 = vadd.f32 %v2810_v3, %v1708_v16  ;;  %v1546_v48 = vmul.f32 1.442695, %v1316_v59  ;;  %v2014_v4 = vmul.f32 %v2808_v61, %v3536_v35  ;;  %2827 = vpow2.f32 %v1482_v8 }
 0x238   : > { %v1768_v12 = vadd.f32 %v2808_v61, %v1767_v49  ;;  %v2202_v17 = vadd.f32 %v2201_v60, %v1998_v41  ;;  %v1578_v22 = vmul.f32 1.442695, %v1332_v39  ;;  %v2054_v54 = vmul.f32 %v2796_v1, %v3553_v20  ;;  %v4892_v60 = vld [vmem:[#allocation45_spill] sm:$0xff] }
 0x239   : > { %v2814_v58 = vpop.eup %2813  ;;  %2829 = vrcp.f32 %v1709_v50  ;;  %v1610_v31 = vmul.f32 1.442695, %v1348_v27  ;;  %v2030_v38 = vmul.f32 %v2812_v6, %v3549_v57  ;;  %v1642_v19 = vmul.f32 1.442695, %v1364_v51  ;;  %v4891_v51 = vld [vmem:[#allocation124_spill] sm:$0xff] }
 0x23a   : > { %v1769_v63 = vadd.f32 %v2812_v6, %v1768_v12  ;;  %v2203_v13 = vadd.f32 %v2202_v17, %v2014_v4  ;;  %2831 = vpow2.f32 %v1514_v5  ;;  %v2070_v49 = vmul.f32 %v2800_v30, %v4889_v14 }
 0x23b   : > { %v2816_v16 = vpop.eup %2815  ;;  %v2142_v59 = vadd.f32 %v2141_v44, %v2054_v54  ;;  %2833 = vpow2.f32 %v1546_v48  ;;  %v2046_v15 = vmul.f32 %v2814_v58, %v3551_v53  ;;  %v1402_v1 = vmul.f32 1.442695, %v1244_v32  ;;  %v4895_v48 = vld [vmem:[#allocation76_spill] sm:$0xff] }
 0x23c   : > { %v1770_v24 = vadd.f32 %v2814_v58, %v1769_v63  ;;  %v2818_v40 = vpop.eup %2817  ;;  %v2204_v39 = vadd.f32 %v2203_v13, %v2030_v38  ;;  %2835 = vpow2.f32 %v1578_v22  ;;  %v1434_v61 = vmul.f32 1.442695, %v1260_v18  ;;  %v4898_v38 = vld [vmem:[#allocation110_spill] sm:$0xff] }
 0x23d   : > { %2837 = vpow2.f32 %v1610_v31  ;;  %v4890_v54 = vsub.f32 %v4888_v55, %v4198_v45  ;;  %v2820_v27 = vpop.eup %2819  ;;  %v2086_v41 = vmul.f32 %v2810_v3, %v4891_v51  ;;  %v1324_v5 = vsub.f32 %v4892_v60, %v4198_v45  ;;  %v4894_v55 = vld [vmem:[#allocation109_spill] sm:$0xff] }
 0x23e   : > { %v1771_v8 = vadd.f32 %v2816_v16, %v1770_v24  ;;  %2839 = vpow2.f32 %v1642_v19  ;;  %v4893_v56 = vsub.f32 %v4800_v25, %v4198_v45  ;;  %v2143_v50 = vadd.f32 %v2142_v59, %v2070_v49  ;;  %v4896_v25 = vld [vmem:[#allocation63_spill] sm:$0xff]  ;;  %v4900_v24 = vld [vmem:[#allocation92_spill] sm:$0xff] }
 0x23f   : > { %v1466_v30 = vmul.f32 1.442695, %v4890_v54  ;;  %v2822_v6 = vpop.eup %2821  ;;  %v2205_v21 = vadd.f32 %v2204_v39, %v2046_v15  ;;  %2841 = vpow2.f32 %v1402_v1  ;;  %v2062_v18 = vmul.f32 %v2816_v16, %v3553_v20 }
 0x240   : > { %v1498_v32 = vmul.f32 1.442695, %v4893_v56  ;;  %v1772_v44 = vadd.f32 %v2818_v40, %v1771_v8  ;;  %v1959_v12 = vmul.f32 %v2822_v6, %v4894_v55  ;;  %v1340_v3 = vsub.f32 %v4895_v48, %v4198_v45  ;;  %v2824_v4 = vpop.eup %2823 }
 0x241   : > { %2843 = vpow2.f32 %v1434_v61  ;;  %v1356_v22 = vsub.f32 %v4874_v29, %v4198_v45  ;;  %v4897_v58 = vmax.f32 %v4194_v43, %v4882_v46  ;;  %v1710_v31 = vadd.f32 %v2824_v4, %v2822_v6 }
 0x242   : > { %v1773_v17 = vadd.f32 %v2820_v27, %v1772_v44  ;;  %2845 = vpow2.f32 %v1466_v30  ;;  %v1975_v13 = vmul.f32 %v2824_v4, %v4898_v38  ;;  %v4899_v19 = vsub.f32 %v4798_v11, %v4198_v45  ;;  %v2826_v49 = vpop.eup %2825  ;;  %v4901_v11 = vld [vmem:[#allocation133_spill] sm:$0xff] }
 0x243   : > { %v1163_v63 = vmax.f32 %v4897_v58, %v4896_v25  ;;  %2847 = vpow2.f32 %v1498_v32  ;;  %v2206_v59 = vadd.f32 %v2205_v21, %v2062_v18  ;;  %v1372_v29 = vsub.f32 %v4184_v37, %v4198_v45 }
 0x244   : > { %v1530_v16 = vmul.f32 1.442695, %v4899_v19  ;;  %2849 = vrcp.f32 %v1773_v17  ;;  %v1711_v39 = vadd.f32 %v2826_v49, %v1710_v31  ;;  %v1991_v43 = vmul.f32 %v2826_v49, %v4804_v26  ;;  %v2828_v61 = vpop.eup %2827 }
 0x245   : > { %v1164_v15 = vmax.f32 %v1163_v63, %v4900_v24  ;;  %v2145_v1 = vadd.f32 %v1975_v13, %v1959_v12  ;;  %v1562_v8 = vmul.f32 1.442695, %v1324_v5  ;;  %v2144_v54 = vadd.f32 %v2143_v50, %v2086_v41  ;;  %v4291_v5 = vpop.f32.mrf.mxu1  ;;  %v4902_v41 = vld [vmem:[#allocation108_spill] sm:$0xff]  ;;  %v4903_v63 = vld [vmem:[#allocation17_spill] sm:$0xff]  ;;  %v4904_v13 = vld [vmem:[#allocation46_spill] sm:$0xff] }
 0x246   : > { %v2078_v30 = vmul.f32 %v2818_v40, %v4889_v14  ;;  %v1594_v60 = vmul.f32 1.442695, %v1340_v3  ;;  %v2830_v32 = vpop.eup %2829  ;;  %v1712_v6 = vadd.f32 %v2828_v61, %v1711_v39  ;;  %v2007_v37 = vmul.f32 %v2828_v61, %v4773_v47 }
 0x247   : > { %v4288_v56 = vmax.f32 %v1164_v15, %v4901_v11  ;;  %v2146_v45 = vadd.f32 %v2145_v1, %v1991_v43  ;;  %2851 = vpow2.f32 %v1530_v16  ;;  %v2832_v44 = vpop.eup %2831  ;;  %v2246_v21 = vmul.f32 %v2830_v32, %v2144_v54 }
 0x248   : > { %v2207_v18 = vadd.f32 %v2206_v59, %v2078_v30  ;;  %v1626_v12 = vmul.f32 1.442695, %v1356_v22  ;;  %v1228_v40 = vmax.f32 %v4208_v28, %v4902_v41  ;;  %v2834_v50 = vpop.eup %2833  ;;  %v1713_v48 = vadd.f32 %v2832_v44, %v1712_v6 }
 0x249   : > { %v2147_v3 = vadd.f32 %v2146_v45, %v2007_v37  ;;  %2853 = vpow2.f32 %v1562_v8  ;;  %v1658_v4 = vmul.f32 1.442695, %v1372_v29  ;;  %v2836_v17 = vpop.eup %2835  ;;  %2262 = vst [vmem:[%s3858_s6 + $0x28] sm:$0xff] %v2246_v21  ;;  %v2094_v58 = vmul.f32 %v2820_v27, %v4891_v51  ;;  %v4905_v27 = vld [vmem:[#allocation77_spill] sm:$0xff] }
 0x24a   : > { %v1237_v31 = vsub.f32 %v4903_v63, %v4288_v56  ;;  %v1253_v22 = vsub.f32 %v4904_v13, %v4288_v56  ;;  %v2838_v19 = vpop.eup %2837  ;;  %v1714_v16 = vadd.f32 %v2834_v50, %v1713_v48  ;;  %v2023_v49 = vmul.f32 %v2832_v44, %v4814_v33 }
 0x24b   : > { %2855 = vpow2.f32 %v1594_v60  ;;  %v4303_v28 = vmax.f32 %v1228_v40, %v4291_v5  ;;  %v4305_v59 = vpop.eup %2839  ;;  %v2208_v29 = vadd.f32 %v2207_v18, %v2094_v58  ;;  %v2039_v15 = vmul.f32 %v2834_v50, %v4775_v62 }
 0x24c   : > { %2857 = vpow2.f32 %v1626_v12  ;;  %v1269_v39 = vsub.f32 %v4905_v27, %v4288_v56  ;;  %v2842_v43 = vpop.eup %2841  ;;  %v1715_v1 = vadd.f32 %v2836_v17, %v1714_v16  ;;  %v2148_v8 = vadd.f32 %v2147_v3, %v2023_v49 }
 0x24d   : > { %2859 = vpow2.f32 %v1658_v4  ;;  %v1285_v61 = vsub.f32 %v4877_v42, %v4288_v56  ;;  %v2055_v30 = vmul.f32 %v2836_v17, %v4776_v0  ;;  %v1967_v60 = vmul.f32 %v2842_v43, %v4894_v55 }
 0x24e   : > { %v2844_v54 = vpop.eup %2843  ;;  %v1388_v32 = vmul.f32 1.442695, %v1237_v31  ;;  %v1420_v6 = vmul.f32 1.442695, %v1253_v22  ;;  %v1716_v45 = vadd.f32 %v2838_v19, %v1715_v1  ;;  %v1301_v18 = vsub.f32 %v4179_v9, %v4288_v56 }
 0x24f   : > { %v2846_v37 = vpop.eup %2845  ;;  %v1774_v44 = vadd.f32 %v2844_v54, %v2842_v43  ;;  %v1983_v21 = vmul.f32 %v2844_v54, %v4898_v38  ;;  %v1317_v40 = vsub.f32 %v4882_v46, %v4288_v56  ;;  %v1333_v42 = vsub.f32 %v4896_v25, %v4288_v56 }
 0x250   : > { %v2848_v12 = vpop.eup %2847  ;;  %2861 = vpow2.f32 %v1388_v32  ;;  %v1452_v55 = vmul.f32 1.442695, %v1269_v39  ;;  %v1717_v48 = vadd.f32 %v4305_v59, %v1716_v45  ;;  %v2149_v3 = vadd.f32 %v2148_v8, %v2039_v15  ;;  %v4907_v8 = vld [vmem:[#allocation62_spill] sm:$0xff]  ;;  %v4908_v32 = vld [vmem:[#allocation91_spill] sm:$0xff] }
 0x251   : > { %v2850_v50 = vpop.eup %2849  ;;  %v1775_v4 = vadd.f32 %v2846_v37, %v1774_v44  ;;  %v1999_v38 = vmul.f32 %v2846_v37, %v4804_v26  ;;  %v2209_v58 = vadd.f32 %v1983_v21, %v1967_v60  ;;  %2863 = vpow2.f32 %v1420_v6  ;;  %v4909_v21 = vld [vmem:[#allocation132_spill] sm:$0xff] }
 0x252   : > { %v2254_v17 = vmul.f32 %v2850_v50, %v2208_v29  ;;  %v1484_v9 = vmul.f32 1.442695, %v1285_v61  ;;  %2865 = vrcp.f32 %v1717_v48  ;;  %v1349_v46 = vsub.f32 %v4900_v24, %v4288_v56  ;;  %v4906_v29 = vld [vmem:[#allocation32_spill] sm:$0xff] }
 0x253   : > { %v1776_v63 = vadd.f32 %v2848_v12, %v1775_v4  ;;  %v1365_v25 = vsub.f32 %v4901_v11, %v4288_v56  ;;  %v2015_v13 = vmul.f32 %v2848_v12, %v4773_v47  ;;  %v2210_v22 = vadd.f32 %v2209_v58, %v1999_v38 }
 0x254   : > { %v2852_v31 = vpop.eup %2851  ;;  %2270 = vst [vmem:[%s3858_s6 + $0x68] sm:$0xff] %v2254_v17  ;;  %2867 = vpow2.f32 %v1452_v55  ;;  %v1516_v16 = vmul.f32 1.442695, %v1301_v18  ;;  %v1548_v49 = vmul.f32 1.442695, %v1317_v40  ;;  %v1245_v15 = vsub.f32 %v4906_v29, %v4303_v28  ;;  %v4910_v55 = vld [vmem:[#allocation18_spill] sm:$0xff] }
 0x255   : > { %v1777_v26 = vadd.f32 %v2852_v31, %v1776_v63  ;;  %v2150_v39 = vadd.f32 %v2149_v3, %v2055_v30  ;;  %v2211_v43 = vadd.f32 %v2210_v22, %v2015_v13  ;;  %2869 = vpow2.f32 %v1484_v9 }
 0x256   : > { %v2854_v27 = vpop.eup %2853  ;;  %v1580_v24 = vmul.f32 1.442695, %v1333_v42  ;;  %v2071_v1 = vmul.f32 %v2838_v19, %v4781_v7  ;;  %v1612_v56 = vmul.f32 1.442695, %v1349_v46  ;;  %v1261_v47 = vsub.f32 %v4907_v8, %v4303_v28 }
 0x257   : > { %v1778_v11 = vadd.f32 %v2854_v27, %v1777_v26  ;;  %v2031_v54 = vmul.f32 %v2852_v31, %v4814_v33  ;;  %2871 = vpow2.f32 %v1516_v16  ;;  %v1644_v60 = vmul.f32 1.442695, %v1365_v25 }
 0x258   : > { %v2856_v61 = vpop.eup %2855  ;;  %v1277_v6 = vsub.f32 %v4908_v32, %v4303_v28  ;;  %2873 = vpow2.f32 %v1548_v49  ;;  %v2151_v44 = vadd.f32 %v2150_v39, %v2071_v1  ;;  %v1293_v18 = vsub.f32 %v4909_v21, %v4303_v28 }
 0x259   : > { %v2858_v37 = vpop.eup %2857  ;;  %v1779_v30 = vadd.f32 %v2856_v61, %v1778_v11  ;;  %v2212_v19 = vadd.f32 %v2211_v43, %v2031_v54  ;;  %2875 = vpow2.f32 %v1580_v24  ;;  %v1404_v40 = vmul.f32 1.442695, %v1245_v15 }
 0x25a   : > { %v4337_v45 = vpop.eup %2859  ;;  %2877 = vpow2.f32 %v1612_v56  ;;  %v1436_v33 = vmul.f32 1.442695, %v1261_v47  ;;  %v2087_v42 = vmul.f32 %v4305_v59, %v4783_v23  ;;  %v1309_v50 = vsub.f32 %v4910_v55, %v4303_v28 }
 0x25b   : > { %v1780_v12 = vadd.f32 %v2858_v37, %v1779_v30  ;;  %2879 = vpow2.f32 %v1644_v60  ;;  %v1468_v48 = vmul.f32 1.442695, %v1277_v6  ;;  %v2047_v38 = vmul.f32 %v2854_v27, %v4775_v62 }
 0x25c   : > { %v1325_v17 = vsub.f32 %v4857_v10, %v4303_v28  ;;  %2881 = vpow2.f32 %v1404_v40  ;;  %v1500_v9 = vmul.f32 1.442695, %v1293_v18  ;;  %v2152_v59 = vadd.f32 %v2151_v44, %v2087_v42 }
 0x25d   : > { %v2862_v3 = vpop.eup %2861  ;;  %v1781_v4 = vadd.f32 %v4337_v45, %v1780_v12  ;;  %2883 = vpow2.f32 %v1436_v33  ;;  %v2213_v46 = vadd.f32 %v2212_v19, %v2047_v38  ;;  %v1341_v25 = vsub.f32 %v4880_v52, %v4303_v28 }
 0x25e   : > { %v1960_v58 = vmul.f32 %v2862_v3, %v3530_v34  ;;  %v2864_v63 = vpop.eup %2863  ;;  %v1532_v22 = vmul.f32 1.442695, %v1309_v50  ;;  %v2063_v26 = vmul.f32 %v2856_v61, %v4776_v0  ;;  %v1357_v49 = vsub.f32 %v4902_v41, %v4303_v28 }
 0x25f   : > { %2885 = vrcp.f32 %v1781_v4  ;;  %v2866_v31 = vpop.eup %2865  ;;  %v1718_v13 = vadd.f32 %v2864_v63, %v2862_v3  ;;  %v1976_v62 = vmul.f32 %v2864_v63, %v3532_v2  ;;  %v1564_v29 = vmul.f32 1.442695, %v1325_v17 }
 0x260   : > { %2887 = vpow2.f32 %v1468_v48  ;;  %v2247_v16 = vmul.f32 %v2866_v31, %v2152_v59  ;;  %v2214_v43 = vadd.f32 %v2213_v46, %v2063_v26  ;;  %v1373_v24 = vsub.f32 %v4291_v5, %v4303_v28 }
 0x261   : > { %v2868_v10 = vpop.eup %2867  ;;  %v2153_v39 = vadd.f32 %v1976_v62, %v1960_v58  ;;  %2889 = vpow2.f32 %v1500_v9  ;;  %v1596_v56 = vmul.f32 1.442695, %v1341_v25  ;;  %v2079_v8 = vmul.f32 %v2858_v37, %v4781_v7 }
 0x262   : > { %v1719_v15 = vadd.f32 %v2868_v10, %v1718_v13  ;;  %v1992_v27 = vmul.f32 %v2868_v10, %v3534_v36  ;;  %v2870_v52 = vpop.eup %2869  ;;  %2263 = vst [vmem:[%s3858_s6 + $0x30] sm:$0xff] %v2247_v16  ;;  %2891 = vpow2.f32 %v1532_v22  ;;  %v1628_v54 = vmul.f32 1.442695, %v1357_v49 }
 0x263   : > { %v2008_v61 = vmul.f32 %v2870_v52, %v3536_v35  ;;  %2893 = vpow2.f32 %v1564_v29  ;;  %v2215_v32 = vadd.f32 %v2214_v43, %v2079_v8  ;;  %v1660_v6 = vmul.f32 1.442695, %v1373_v24 }
 0x264   : > { %v1720_v1 = vadd.f32 %v2870_v52, %v1719_v15  ;;  %v2154_v11 = vadd.f32 %v2153_v39, %v1992_v27  ;;  %v2872_v0 = vpop.eup %2871  ;;  %2895 = vpow2.f32 %v1596_v56  ;;  %v2095_v28 = vmul.f32 %v4337_v45, %v4783_v23 }
 0x265   : > { %v2874_v41 = vpop.eup %2873  ;;  %v2024_v7 = vmul.f32 %v2872_v0, %v3549_v57  ;;  %2897 = vpow2.f32 %v1628_v54 }
 0x266   : > { %v1721_v47 = vadd.f32 %v2872_v0, %v1720_v1  ;;  %v2876_v60 = vpop.eup %2875  ;;  %v2155_v19 = vadd.f32 %v2154_v11, %v2008_v61  ;;  %v2216_v12 = vadd.f32 %v2215_v32, %v2095_v28  ;;  %2899 = vpow2.f32 %v1660_v6 }
 0x267   : > { %v2878_v30 = vpop.eup %2877  ;;  %v2040_v45 = vmul.f32 %v2874_v41, %v3551_v53  ;;  %v2056_v25 = vmul.f32 %v2876_v60, %v3553_v20 }
 0x268   : > { %v1722_v44 = vadd.f32 %v2874_v41, %v1721_v47  ;;  %v2880_v5 = vpop.eup %2879  ;;  %v2156_v55 = vadd.f32 %v2155_v19, %v2024_v7  ;;  %v2072_v26 = vmul.f32 %v2878_v30, %v4889_v14 }
 0x269   : > { %v2882_v21 = vpop.eup %2881 }
 0x26a   : > { %v1723_v18 = vadd.f32 %v2876_v60, %v1722_v44  ;;  %v2884_v37 = vpop.eup %2883  ;;  %v1968_v40 = vmul.f32 %v2882_v21, %v3530_v34  ;;  %v2157_v63 = vadd.f32 %v2156_v55, %v2040_v45 }
 0x26b   : > { %v1782_v50 = vadd.f32 %v2884_v37, %v2882_v21  ;;  %v1984_v48 = vmul.f32 %v2884_v37, %v3532_v2 }
 0x26c   : > { %v2886_v33 = vpop.eup %2885  ;;  %v1724_v42 = vadd.f32 %v2878_v30, %v1723_v18  ;;  %v2158_v62 = vadd.f32 %v2157_v63, %v2056_v25 }
 0x26d   : > { %v2888_v3 = vpop.eup %2887  ;;  %v2255_v4 = vmul.f32 %v2886_v33, %v2216_v12  ;;  %v2217_v9 = vadd.f32 %v1984_v48, %v1968_v40 }
 0x26e   : > { %v1725_v23 = vadd.f32 %v2880_v5, %v1724_v42  ;;  %v1783_v38 = vadd.f32 %v2888_v3, %v1782_v50  ;;  %v2890_v17 = vpop.eup %2889  ;;  %v2000_v58 = vmul.f32 %v2888_v3, %v3534_v36  ;;  %v2159_v27 = vadd.f32 %v2158_v62, %v2072_v26 }
 0x26f   : > { %2271 = vst [vmem:[%s3858_s6 + $0x70] sm:$0xff] %v2255_v4  ;;  %v2892_v59 = vpop.eup %2891  ;;  %v2016_v2 = vmul.f32 %v2890_v17, %v3536_v35  ;;  %v2088_v35 = vmul.f32 %v2880_v5, %v4891_v51 }
 0x270   : > { %2901 = vrcp.f32 %v1725_v23  ;;  %v1784_v34 = vadd.f32 %v2890_v17, %v1783_v38  ;;  %v2218_v46 = vadd.f32 %v2217_v9, %v2000_v58  ;;  %v2894_v13 = vpop.eup %2893  ;;  %v2032_v36 = vmul.f32 %v2892_v59, %v3549_v57 }
 0x271   : > { %v2896_v16 = vpop.eup %2895  ;;  %v2048_v24 = vmul.f32 %v2894_v13, %v3551_v53  ;;  %v2160_v1 = vadd.f32 %v2159_v27, %v2088_v35 }
 0x272   : > { %v1785_v31 = vadd.f32 %v2892_v59, %v1784_v34  ;;  %v2219_v10 = vadd.f32 %v2218_v46, %v2016_v2  ;;  %v2898_v29 = vpop.eup %2897  ;;  %v2064_v57 = vmul.f32 %v2896_v16, %v3553_v20 }
 0x273   : > { %v2900_v15 = vpop.eup %2899  ;;  %v2080_v41 = vmul.f32 %v2898_v29, %v4889_v14 }
 0x274   : > { %v1786_v22 = vadd.f32 %v2894_v13, %v1785_v31  ;;  %v2220_v52 = vadd.f32 %v2219_v10, %v2032_v36  ;;  %v2096_v61 = vmul.f32 %v2900_v15, %v4891_v51 }
 0x276   : > { %v1787_v49 = vadd.f32 %v2896_v16, %v1786_v22  ;;  %v2221_v11 = vadd.f32 %v2220_v52, %v2048_v24 }
 0x278   : > { %v1788_v39 = vadd.f32 %v2898_v29, %v1787_v49  ;;  %v2222_v8 = vadd.f32 %v2221_v11, %v2064_v57 }
 0x27a   : > { %v1789_v43 = vadd.f32 %v2900_v15, %v1788_v39  ;;  %v2223_v47 = vadd.f32 %v2222_v8, %v2080_v41 }
 0x27c   : > { %2903 = vrcp.f32 %v1789_v43  ;;  %v2224_v53 = vadd.f32 %v2223_v47, %v2096_v61 }
 0x27d   : > { %v2902_v56 = vpop.eup %2901 }
 0x27e   : > { %v2248_v0 = vmul.f32 %v2902_v56, %v2160_v1 }
 0x280   : > { %2264 = vst [vmem:[%s3858_s6 + $0x38] sm:$0xff] %v2248_v0 }
 0x289   : > { %v2904_v54 = vpop.eup %2903 }
 0x28a   : > { %v2256_v20 = vmul.f32 %v2904_v54, %v2224_v53 }
 0x28c   : > { %2272 = vst [vmem:[%s3858_s6 + $0x78] sm:$0xff] %v2256_v20 }
 0x28d   : > { %2918 = shalt.err (!%p2915_p5)
}
 0x28e   : > { %s2919_s27 = scalar_lea.hbm %s4388_s19, 2048  ;;  %s2923_s30 = scalar_lea.hbm %s4435_s3, 4096 }
 0x28f   : > { %p2920_p7 = scmp.ne.s32.totalorder %s4388_s19, %s2919_s27  ;;  %p2924_p12 = scmp.lt.s32.totalorder %s4388_s19, %s4435_s3 }
 0x290   : > { %p2925_p13 = scmp.lt.s32.totalorder %s2923_s30, %s2919_s27 }
 0x291   : > { %p2921_p10 = pnand %p2920_p7, %p3035_p6 }
 0x292   : > { %p2926_p0 = por %p2925_p13, %p2924_p12 }
 0x293   : > { %p2922_p11 = pneg %p2921_p10 }
 0x295   : > { %p2927_p1 = pnand %p2926_p0, %p2922_p11 }
 0x297   : > { %2930 = shalt.err (!%p2927_p1)
}
 0x298   : > { %s2970_s10 = smov 256   ;;  %s2971_s6 = smov 512  }
 0x299   : > { %s2972_s8 = smov 16  }
 0x29a   : > { %2487 = dma.vmem_to_hbm [thread:$0]  (%p3035_p6), %s4383_s7, 2048, %s4388_s19, %s2274_s20, %s2970_s10, %s2971_s6, %s2972_s8  }
 0x29b PF: > { %s2302_s9 = sand.u32 1, %s2953_s12   ;;  %p2490_p2 = pnand %p2375_p9, %p3039_p8 }
 0x29c   : > { %s2303_s11 = scalar_lea.sflag [#allocation5], %s2302_s9 }
 0x29d   : > { %p2491_p3 = pneg %p2490_p2 }
 0x29f   : > { %2948 = dma.done.wait (%p2491_p3), %s2303_s11, 2048  }
 0x2a0   : > { %2950 = vsyncadd (%p2491_p3), %s2303_s11, 4294965248  ;;  %p13_p4 = scmp.ge.s32.totalorder %s3016_s18, 4   ;;  %s4911_s12 = smov %s2957_s13 }
 0x2a1   : > { %s4912_s13 = smov %s2961_s14  ;;  %s4913_s14 = smov %s3029_s21 }
 0x2a2   : > { %s4914_s15 = smov %s3016_s18  ;;  %15 = sbr.rel (!%p13_p4) target bundleno = 3 (0x3), region = 141 }
 0x2a7   :  { %2308 = vsyncpa [#allocation5], 1 }
 0x2a8   :  { %2310 = vsyncpa [#allocation5 + $0x1], 1 }

</bundles_post_ra>
